<compile_context>
chip_gen: v5e
topology: v5e:2x2
jax: 0.10.0
libtpu: 0.0.40
codegen_flags: <defaults>
</compile_context>

<pallas_src>
import jax
import jax.numpy as jnp
from jax.experimental import pallas as pl
from jax.experimental.pallas import tpu as pltpu


# ----------------------------------------------------------------------------
# Kernel
# ----------------------------------------------------------------------------
def _make_seq_encoder_kernel(k_szs, dils, e_ch, T, L, pad_al):
    """Kernel over one lane-major block of L = bt*T time steps.

    Refs (in order): x (Cin, L), tpos (1, L) int32, then the weights
    [wf, bf, (wh, bh) * n_hw, wm1, bm1, wm2, bm2, wl, bl], output (e_ch, L),
    and (if pad_al > 0) a bf16 staging scratch (e_ch, pad_al + L).
    """
    n_hw = len(k_szs)
    n_w = 8 + 2 * n_hw
    need_scratch = pad_al > 0

    def kernel(*refs):
        x_ref, tpos_ref = refs[0], refs[1]
        w_refs = refs[2:2 + n_w]
        o_ref = refs[2 + n_w]
        pad_ref = refs[-1] if need_scratch else None

        wf_ref, bf_ref = w_refs[0], w_refs[1]
        hw_refs = w_refs[2:2 + 2 * n_hw]
        wm1_ref, bm1_ref, wm2_ref, bm2_ref, wl_ref, bl_ref = w_refs[2 + 2 * n_hw:]

        x = x_ref[...].astype(jnp.bfloat16)               # (Cin, L)
        tpos = tpos_ref[...]                              # (1, L) int32, t mod T

        # ---- front_1x1: Conv1d(input_ch, e_ch, 1) == W @ x + b (one wide dot)
        h = jnp.dot(wf_ref[...], x,
                    preferred_element_type=jnp.float32) + bf_ref[...]

        # ---- HighwayDCBlock: causal dilated highway convs (use_glu=False) ----
        for li in range(n_hw):
            k, d = k_szs[li], dils[li]
            wh_ref = hw_refs[2 * li]                       # (2e, k*e) bf16
            bh = hw_refs[2 * li + 1][...]                  # (2e, 1)  f32
            h_bf = h.astype(jnp.bfloat16)
            shifts = [(k - 1 - j) * d for j in range(k)]   # causal shift per tap

            if any(s > 0 for s in shifts):
                # One lane-aligned staging store of the folded activations;
                # shifted taps are plain lane-offset loads of this slab.
                pad_ref[:, pad_al:pad_al + L] = h_bf

            H = None
            for j, s in enumerate(shifts):
                if s == 0:
                    tap = h_bf                              # reuse in-register value
                else:
                    tap = pad_ref[:, pad_al - s:pad_al - s + L]
                    # Zero lanes whose source lies before t=0 of their own
                    # sequence (halo garbage / previous sequence's tail).
                    tap = jnp.where(tpos >= s, tap, 0.0)
                c = jnp.dot(wh_ref[:, j * e_ch:(j + 1) * e_ch], tap,
                            preferred_element_type=jnp.float32)
                H = c if H is None else H + c
            H = H + bh                                      # (2e, L) f32

            g = jax.nn.sigmoid(H[:e_ch, :])
            h = h + g * (H[e_ch:, :] - h)                   # highway gate

        # ---- mid_1x1: Conv1x1 -> ReLU -> Conv1x1 -> ReLU ----
        m = jnp.maximum(
            jnp.dot(wm1_ref[...], h.astype(jnp.bfloat16),
                    preferred_element_type=jnp.float32) + bm1_ref[...], 0.0)
        m = jnp.maximum(
            jnp.dot(wm2_ref[...], m.astype(jnp.bfloat16),
                    preferred_element_type=jnp.float32) + bm2_ref[...], 0.0)

        # ---- last_1x1 ----
        out = jnp.dot(wl_ref[...], m.astype(jnp.bfloat16),
                      preferred_element_type=jnp.float32) + bl_ref[...]
        o_ref[...] = out.astype(o_ref.dtype)

    return kernel


# ----------------------------------------------------------------------------
# Hardware-aware sizing helpers
# ----------------------------------------------------------------------------
def _vmem_limit_bytes():
    """~85% of per-core VMEM (128 MiB on v5e/v6e, 64 MiB on v7x); safe fallback."""
    try:
        info = pltpu.get_tpu_info()
        cap = None
        for name in ("vmem_capacity_bytes", "vmem_size_bytes", "vmem_bytes"):
            cap = getattr(info, name, None)
            if cap:
                break
        if cap and 16 * (1 << 20) <= int(cap) <= 1024 * (1 << 20):
            return int(int(cap) * 0.85)
    except Exception:
        pass
    return 64 * 1024 * 1024   # previous known-good conservative value


def _min_grid_steps():
    """>=2 grid steps only pays off on chips with 2 TensorCores per device."""
    try:
        kind = jax.devices()[0].device_kind.lower()
    except Exception:
        return 2
    if ("lite" in kind or "v5e" in kind or "v6e" in kind
            or "v2" in kind or "v3" in kind):
        return 1            # single TensorCore per JAX device
    return 2                # v4/v5p megacore, v7x


def _pick_batch_tile(B, Cin, e_ch, T, pad_al, packed, vmem_budget, min_steps):
    """Largest batch tile that (a) yields a lane-valid block (bt == B or
    bt*T % 128 == 0), (b) fits the VMEM budget, (c) keeps >= min_steps grid
    steps when possible."""
    w_bytes = sum(int(w.size) * w.dtype.itemsize for w in packed)
    fixed = 2 * w_bytes + e_ch * pad_al * 2 + (2 << 20)      # weights (dbl-buf) + halo + slack

    def per_seq_bytes():
        io = 2 * (Cin * T * 4 + e_ch * T * 4 + T * 4)        # double-buffered in/out/tpos
        scratch = e_ch * T * 2                               # bf16 staging slab
        live = 32 * e_ch * T                                 # resident f32/bf16 intermediates
        return io + scratch + live

    valid = [bt for bt in range(1, B + 1)
             if B % bt == 0 and (bt == B or (bt * T) % 128 == 0)]
    fitting = [bt for bt in valid if fixed + bt * per_seq_bytes() <= vmem_budget]
    pool = fitting if fitting else [min(valid)]
    preferred = [bt for bt in pool if (B // bt) >= min_steps]
    return max(preferred) if preferred else max(pool)


# ----------------------------------------------------------------------------
# Wrapper
# ----------------------------------------------------------------------------
def pack_params(params, k_szs):
    """Pre-cast matmul weights to bf16 ONCE (biases stay f32)."""
    w = [params["wf"].astype(jnp.bfloat16), params["bf"]]
    for li in range(len(k_szs)):
        w += [params[f"wh{li}"].astype(jnp.bfloat16), params[f"bh{li}"]]
    w += [params["wm1"].astype(jnp.bfloat16), params["bm1"],
          params["wm2"].astype(jnp.bfloat16), params["bm2"],
          params["wl"].astype(jnp.bfloat16), params["bl"]]
    return tuple(w)


def seq_encoder_forward(x_nct, packed, k_szs, dils):
    """x_nct: (B, input_ch, T) NCT like PyTorch; returns (B, e_ch, T)."""
    B, Cin, T = x_nct.shape
    e_ch = packed[0].shape[0]
    max_pad = max([(k - 1) * d for k, d in zip(k_szs, dils)], default=0)
    pad_al = ((max_pad + 127) // 128) * 128 if max_pad > 0 else 0

    vmem_budget = _vmem_limit_bytes()
    min_steps = _min_grid_steps()
    bt = _pick_batch_tile(B, Cin, e_ch, T, pad_al, packed, vmem_budget, min_steps)
    L = bt * T
    steps = B // bt

    # Lane-major layout: (C, B*T) with each sequence a contiguous T-lane run.
    x_flat = jnp.transpose(x_nct, (1, 0, 2)).reshape(Cin, B * T)
    # Per-lane local time index (t mod T), precomputed outside the kernel.
    tpos = jnp.tile(jnp.arange(T, dtype=jnp.int32), B).reshape(1, B * T)

    in_specs = [pl.BlockSpec((Cin, L), lambda i: (0, i)),
                pl.BlockSpec((1, L), lambda i: (0, i))]
    for w in packed:
        # Whole weight per step, constant index map -> never re-fetched.
        # (Single-buffering them via pl.Buffered(1) would shave a little more
        #  VMEM; left at default for lowering robustness.)
        in_specs.append(pl.BlockSpec(w.shape, lambda i, nd=w.ndim: (0,) * nd))

    scratch_shapes = []
    if pad_al > 0:
        scratch_shapes.append(pltpu.VMEM((e_ch, pad_al + L), jnp.bfloat16))

    kernel = _make_seq_encoder_kernel(tuple(k_szs), tuple(dils),
                                      e_ch, T, L, pad_al)

    out_flat = pl.pallas_call(
        kernel,
        out_shape=jax.ShapeDtypeStruct((e_ch, B * T), x_nct.dtype),
        grid=(steps,),
        in_specs=in_specs,
        out_specs=pl.BlockSpec((e_ch, L), lambda i: (0, i)),
        scratch_shapes=scratch_shapes,
        compiler_params=pltpu.CompilerParams(
            dimension_semantics=("parallel",),
            vmem_limit_bytes=vmem_budget),
    )(x_flat, tpos, *packed)

    return jnp.transpose(out_flat.reshape(e_ch, B, T), (1, 0, 2))


# ----------------------------------------------------------------------------
# Pure-JAX reference (identical semantics) and synthetic parameters
# ----------------------------------------------------------------------------
def reference_forward(x_nct, params, k_szs, dils, matmul_dtype=jnp.float32):
    """Channels-first reference.  matmul_dtype=bf16 reproduces the kernel's MXU
    operand precision exactly (f32 accumulation either way)."""
    e = params["wf"].shape[0]
    B, Cin, T = x_nct.shape

    def mm(w, a):  # (o, i) @ (B, i, T) -> (B, o, T), f32 accumulation
        return jnp.einsum("oi,bit->bot",
                          w.astype(matmul_dtype), a.astype(matmul_dtype),
                          preferred_element_type=jnp.float32)

    h = mm(params["wf"], x_nct) + params["bf"]
    for li, (k, d) in enumerate(zip(k_szs, dils)):
        W = params[f"wh{li}"]                     # (2e, k*e) stacked taps
        H = jnp.zeros((B, 2 * e, T), jnp.float32) + params[f"bh{li}"]
        for j in range(k):
            s = (k - 1 - j) * d
            xs = jnp.pad(h, ((0, 0), (0, 0), (s, 0)))[:, :, :T]
            H = H + mm(W[:, j * e:(j + 1) * e], xs)
        g = jax.nn.sigmoid(H[:, :e, :])
        h = h + g * (H[:, e:, :] - h)
    m = jnp.maximum(mm(params["wm1"], h) + params["bm1"], 0.0)
    m = jnp.maximum(mm(params["wm2"], m) + params["bm2"], 0.0)
    return mm(params["wl"], m) + params["bl"]


def init_params(key, input_ch, e_ch, k_szs):
    """Deterministic synthetic parameters, channels-first kernel layout.

    PyTorch Conv1d weights are (out, in, k); here 1x1 convs -> (out, in),
    dilated convs -> taps stacked along the contraction dim: (2e, k*e) where
    columns [j*e:(j+1)*e] hold tap j (= W[:, :, j]).  Biases -> (out, 1).
    """
    keys = iter(jax.random.split(key, 32))
    p = {}

    def w(shape, fan_in):
        return (jax.random.normal(next(keys), shape, jnp.float32)
                / jnp.sqrt(jnp.float32(fan_in)))

    p["wf"] = w((e_ch, input_ch), input_ch)
    p["bf"] = w((e_ch, 1), input_ch)
    for li, k in enumerate(k_szs):
        p[f"wh{li}"] = w((2 * e_ch, k * e_ch), k * e_ch)
        p[f"bh{li}"] = w((2 * e_ch, 1), k * e_ch)
    p["wm1"] = w((e_ch, e_ch), e_ch); p["bm1"] = w((e_ch, 1), e_ch)
    p["wm2"] = w((e_ch, e_ch), e_ch); p["bm2"] = w((e_ch, 1), e_ch)
    p["wl"] = w((e_ch, e_ch), e_ch);  p["bl"] = w((e_ch, 1), e_ch)
    return p


if __name__ == "__main__":
    B, input_ch, e_ch, T = 2, 4, 32, 16
    h_k_szs = (3, 3)
    h_dils = (1, 3)

    key = jax.random.PRNGKey(0)
    kx, kp = jax.random.split(key)
    x = jax.random.normal(kx, (B, input_ch, T), jnp.float32)   # NCT like PyTorch
    params = init_params(kp, input_ch, e_ch, h_k_szs)
    packed = pack_params(params, h_k_szs)                      # bf16 weights, once

    fwd = jax.jit(lambda x_, w_: seq_encoder_forward(x_, w_, h_k_szs, h_dils))
    out = jax.block_until_ready(fwd(x, packed))
    assert out.shape == (B, e_ch, T), out.shape

    # Exact-operand reference (same bf16 MXU operands, f32 accumulation).
    ref_bf16 = reference_forward(x, params, h_k_szs, h_dils, jnp.bfloat16)
    assert jnp.allclose(out, ref_bf16, atol=5e-3, rtol=5e-3), (
        float(jnp.max(jnp.abs(out - ref_bf16))))

    # f32 spec semantics sanity check (loose tolerance for bf16 operands).
    ref_f32 = reference_forward(x, params, h_k_szs, h_dils, jnp.float32)
    assert jnp.allclose(out, ref_f32, atol=1e-1, rtol=1e-1), (
        float(jnp.max(jnp.abs(out - ref_f32))))

    print("KERNEL_OK")
</pallas_src>

<mosaic_0001>
module attributes {stable_mosaic.version = 11 : i64} {
  func.func @kernel(%arg0: i32, %arg1: memref<4x32xf32, #tpu.memory_space<vmem>>, %arg2: memref<1x32xi32, #tpu.memory_space<vmem>>, %arg3: memref<32x4xbf16, #tpu.memory_space<vmem>>, %arg4: memref<32x1xf32, #tpu.memory_space<vmem>>, %arg5: memref<64x96xbf16, #tpu.memory_space<vmem>>, %arg6: memref<64x1xf32, #tpu.memory_space<vmem>>, %arg7: memref<64x96xbf16, #tpu.memory_space<vmem>>, %arg8: memref<64x1xf32, #tpu.memory_space<vmem>>, %arg9: memref<32x32xbf16, #tpu.memory_space<vmem>>, %arg10: memref<32x1xf32, #tpu.memory_space<vmem>>, %arg11: memref<32x32xbf16, #tpu.memory_space<vmem>>, %arg12: memref<32x1xf32, #tpu.memory_space<vmem>>, %arg13: memref<32x32xbf16, #tpu.memory_space<vmem>>, %arg14: memref<32x1xf32, #tpu.memory_space<vmem>>, %arg15: memref<32x32xf32, #tpu.memory_space<vmem>>, %arg16: memref<32x160xbf16, #tpu.memory_space<vmem>>) attributes {dimension_semantics = [#tpu.dimension_semantics<parallel>], iteration_bounds = array<i64: 1>, scalar_prefetch = 0 : i64, scratch_operands = 1 : i64, tpu.core_type = #tpu.core_type<tc>, window_params = [{transform_indices = @transform_0, window_bounds = array<i64: 4, 32>}, {transform_indices = @transform_1, window_bounds = array<i64: 1, 32>}, {pipeline_mode = #tpu.pipeline_mode<synchronous>, transform_indices = @transform_2, window_bounds = array<i64: 32, 4>}, {pipeline_mode = #tpu.pipeline_mode<synchronous>, transform_indices = @transform_3, window_bounds = array<i64: 32, 1>}, {pipeline_mode = #tpu.pipeline_mode<synchronous>, transform_indices = @transform_4, window_bounds = array<i64: 64, 96>}, {pipeline_mode = #tpu.pipeline_mode<synchronous>, transform_indices = @transform_5, window_bounds = array<i64: 64, 1>}, {pipeline_mode = #tpu.pipeline_mode<synchronous>, transform_indices = @transform_6, window_bounds = array<i64: 64, 96>}, {pipeline_mode = #tpu.pipeline_mode<synchronous>, transform_indices = @transform_7, window_bounds = array<i64: 64, 1>}, {pipeline_mode = #tpu.pipeline_mode<synchronous>, transform_indices = @transform_8, window_bounds = array<i64: 32, 32>}, {pipeline_mode = #tpu.pipeline_mode<synchronous>, transform_indices = @transform_9, window_bounds = array<i64: 32, 1>}, {pipeline_mode = #tpu.pipeline_mode<synchronous>, transform_indices = @transform_10, window_bounds = array<i64: 32, 32>}, {pipeline_mode = #tpu.pipeline_mode<synchronous>, transform_indices = @transform_11, window_bounds = array<i64: 32, 1>}, {pipeline_mode = #tpu.pipeline_mode<synchronous>, transform_indices = @transform_12, window_bounds = array<i64: 32, 32>}, {pipeline_mode = #tpu.pipeline_mode<synchronous>, transform_indices = @transform_13, window_bounds = array<i64: 32, 1>}, {transform_indices = @transform_14, window_bounds = array<i64: 32, 32>}]} {
    %c0 = arith.constant 0 : index
    %c0_0 = arith.constant 0 : index
    %0 = vector.load %arg1[%c0, %c0_0] : memref<4x32xf32, #tpu.memory_space<vmem>>, vector<4x32xf32>
    %1 = arith.truncf %0 : vector<4x32xf32> to vector<4x32xbf16>
    %c0_1 = arith.constant 0 : index
    %c0_2 = arith.constant 0 : index
    %2 = vector.load %arg2[%c0_1, %c0_2] : memref<1x32xi32, #tpu.memory_space<vmem>>, vector<1x32xi32>
    %c0_3 = arith.constant 0 : index
    %c0_4 = arith.constant 0 : index
    %3 = vector.load %arg3[%c0_3, %c0_4] : memref<32x4xbf16, #tpu.memory_space<vmem>>, vector<32x4xbf16>
    %cst = arith.constant dense<0.000000e+00> : vector<32x32xf32>
    %4 = tpu.matmul %3, %1, %cst {dimension_numbers = #tpu.dot_dimension_numbers<[1], [0], [0], [1], [0, 0, 1, 1], [], []>} : vector<32x4xbf16>, vector<4x32xbf16>, vector<32x32xf32> -> vector<32x32xf32>
    %c0_5 = arith.constant 0 : index
    %c0_6 = arith.constant 0 : index
    %5 = vector.load %arg4[%c0_5, %c0_6] : memref<32x1xf32, #tpu.memory_space<vmem>>, vector<32x1xf32>
    %6 = vector.broadcast %5 : vector<32x1xf32> to vector<32x32xf32>
    %7 = arith.addf %4, %6 : vector<32x32xf32>
    %c0_7 = arith.constant 0 : index
    %c0_8 = arith.constant 0 : index
    %8 = vector.load %arg6[%c0_7, %c0_8] : memref<64x1xf32, #tpu.memory_space<vmem>>, vector<64x1xf32>
    %9 = arith.truncf %7 : vector<32x32xf32> to vector<32x32xbf16>
    %c0_9 = arith.constant 0 : index
    %c128 = arith.constant 128 : index
    %10 = vector.load %arg16[%c0_9, %c128] : memref<32x160xbf16, #tpu.memory_space<vmem>>, vector<32x32xbf16>
    tpu.vector_store %arg16[%c0_9, %c128], %9 {strides = array<i32>} : memref<32x160xbf16, #tpu.memory_space<vmem>>, vector<32x32xbf16>,
    %c0_10 = arith.constant 0 : index
    %c126 = arith.constant 126 : index
    %11 = vector.load %arg16[%c0_10, %c126] : memref<32x160xbf16, #tpu.memory_space<vmem>>, vector<32x32xbf16>
    %c2_i32 = arith.constant 2 : i32
    %12 = vector.broadcast %c2_i32 : i32 to vector<1x32xi32>
    %13 = arith.cmpi sge, %2, %12 : vector<1x32xi32>
    %cst_11 = arith.constant 0.000000e+00 : f32
    %14 = arith.truncf %cst_11 : f32 to bf16
    %15 = vector.shape_cast %13 : vector<1x32xi1> to vector<1x32xi1>
    %16 = vector.broadcast %15 : vector<1x32xi1> to vector<32x32xi1>
    %17 = vector.broadcast %14 : bf16 to vector<32x32xbf16>
    %18 = arith.select %16, %11, %17 : vector<32x32xi1>, vector<32x32xbf16>
    %c0_12 = arith.constant 0 : index
    %c0_13 = arith.constant 0 : index
    %19 = vector.load %arg5[%c0_12, %c0_13] : memref<64x96xbf16, #tpu.memory_space<vmem>>, vector<64x32xbf16>
    %cst_14 = arith.constant dense<0.000000e+00> : vector<64x32xf32>
    %20 = tpu.matmul %19, %18, %cst_14 {dimension_numbers = #tpu.dot_dimension_numbers<[1], [0], [0], [1], [0, 0, 1, 1], [], []>} : vector<64x32xbf16>, vector<32x32xbf16>, vector<64x32xf32> -> vector<64x32xf32>
    %c0_15 = arith.constant 0 : index
    %c127 = arith.constant 127 : index
    %21 = vector.load %arg16[%c0_15, %c127] : memref<32x160xbf16, #tpu.memory_space<vmem>>, vector<32x32xbf16>
    %c1_i32 = arith.constant 1 : i32
    %22 = vector.broadcast %c1_i32 : i32 to vector<1x32xi32>
    %23 = arith.cmpi sge, %2, %22 : vector<1x32xi32>
    %cst_16 = arith.constant 0.000000e+00 : f32
    %24 = arith.truncf %cst_16 : f32 to bf16
    %25 = vector.shape_cast %23 : vector<1x32xi1> to vector<1x32xi1>
    %26 = vector.broadcast %25 : vector<1x32xi1> to vector<32x32xi1>
    %27 = vector.broadcast %24 : bf16 to vector<32x32xbf16>
    %28 = arith.select %26, %21, %27 : vector<32x32xi1>, vector<32x32xbf16>
    %c0_17 = arith.constant 0 : index
    %c32 = arith.constant 32 : index
    %29 = vector.load %arg5[%c0_17, %c32] : memref<64x96xbf16, #tpu.memory_space<vmem>>, vector<64x32xbf16>
    %cst_18 = arith.constant dense<0.000000e+00> : vector<64x32xf32>
    %30 = tpu.matmul %29, %28, %cst_18 {dimension_numbers = #tpu.dot_dimension_numbers<[1], [0], [0], [1], [0, 0, 1, 1], [], []>} : vector<64x32xbf16>, vector<32x32xbf16>, vector<64x32xf32> -> vector<64x32xf32>
    %31 = arith.addf %20, %30 : vector<64x32xf32>
    %c0_19 = arith.constant 0 : index
    %c64 = arith.constant 64 : index
    %32 = vector.load %arg5[%c0_19, %c64] : memref<64x96xbf16, #tpu.memory_space<vmem>>, vector<64x32xbf16>
    %cst_20 = arith.constant dense<0.000000e+00> : vector<64x32xf32>
    %33 = tpu.matmul %32, %9, %cst_20 {dimension_numbers = #tpu.dot_dimension_numbers<[1], [0], [0], [1], [0, 0, 1, 1], [], []>} : vector<64x32xbf16>, vector<32x32xbf16>, vector<64x32xf32> -> vector<64x32xf32>
    %34 = arith.addf %31, %33 : vector<64x32xf32>
    %35 = vector.broadcast %8 : vector<64x1xf32> to vector<64x32xf32>
    %36 = arith.addf %34, %35 : vector<64x32xf32>
    %37 = vector.extract_strided_slice %36 {offsets = [0, 0], sizes = [32, 32], strides = [1, 1]} : vector<64x32xf32> to vector<32x32xf32>
    %38 = arith.negf %37 : vector<32x32xf32>
    %39 = math.exp %38 : vector<32x32xf32>
    %cst_21 = arith.constant 1.000000e+00 : f32
    %40 = vector.broadcast %cst_21 : f32 to vector<32x32xf32>
    %41 = arith.addf %40, %39 : vector<32x32xf32>
    %42 = arith.divf %40, %41 : vector<32x32xf32>
    %43 = vector.extract_strided_slice %36 {offsets = [32, 0], sizes = [32, 32], strides = [1, 1]} : vector<64x32xf32> to vector<32x32xf32>
    %44 = arith.subf %43, %7 : vector<32x32xf32>
    %45 = arith.mulf %42, %44 : vector<32x32xf32>
    %46 = arith.addf %7, %45 : vector<32x32xf32>
    %c0_22 = arith.constant 0 : index
    %c0_23 = arith.constant 0 : index
    %47 = vector.load %arg8[%c0_22, %c0_23] : memref<64x1xf32, #tpu.memory_space<vmem>>, vector<64x1xf32>
    %48 = arith.truncf %46 : vector<32x32xf32> to vector<32x32xbf16>
    %c0_24 = arith.constant 0 : index
    %c128_25 = arith.constant 128 : index
    %49 = vector.load %arg16[%c0_24, %c128_25] : memref<32x160xbf16, #tpu.memory_space<vmem>>, vector<32x32xbf16>
    tpu.vector_store %arg16[%c0_24, %c128_25], %48 {strides = array<i32>} : memref<32x160xbf16, #tpu.memory_space<vmem>>, vector<32x32xbf16>,
    %c0_26 = arith.constant 0 : index
    %c122 = arith.constant 122 : index
    %50 = vector.load %arg16[%c0_26, %c122] : memref<32x160xbf16, #tpu.memory_space<vmem>>, vector<32x32xbf16>
    %c6_i32 = arith.constant 6 : i32
    %51 = vector.broadcast %c6_i32 : i32 to vector<1x32xi32>
    %52 = arith.cmpi sge, %2, %51 : vector<1x32xi32>
    %cst_27 = arith.constant 0.000000e+00 : f32
    %53 = arith.truncf %cst_27 : f32 to bf16
    %54 = vector.shape_cast %52 : vector<1x32xi1> to vector<1x32xi1>
    %55 = vector.broadcast %54 : vector<1x32xi1> to vector<32x32xi1>
    %56 = vector.broadcast %53 : bf16 to vector<32x32xbf16>
    %57 = arith.select %55, %50, %56 : vector<32x32xi1>, vector<32x32xbf16>
    %c0_28 = arith.constant 0 : index
    %c0_29 = arith.constant 0 : index
    %58 = vector.load %arg7[%c0_28, %c0_29] : memref<64x96xbf16, #tpu.memory_space<vmem>>, vector<64x32xbf16>
    %cst_30 = arith.constant dense<0.000000e+00> : vector<64x32xf32>
    %59 = tpu.matmul %58, %57, %cst_30 {dimension_numbers = #tpu.dot_dimension_numbers<[1], [0], [0], [1], [0, 0, 1, 1], [], []>} : vector<64x32xbf16>, vector<32x32xbf16>, vector<64x32xf32> -> vector<64x32xf32>
    %c0_31 = arith.constant 0 : index
    %c125 = arith.constant 125 : index
    %60 = vector.load %arg16[%c0_31, %c125] : memref<32x160xbf16, #tpu.memory_space<vmem>>, vector<32x32xbf16>
    %c3_i32 = arith.constant 3 : i32
    %61 = vector.broadcast %c3_i32 : i32 to vector<1x32xi32>
    %62 = arith.cmpi sge, %2, %61 : vector<1x32xi32>
    %cst_32 = arith.constant 0.000000e+00 : f32
    %63 = arith.truncf %cst_32 : f32 to bf16
    %64 = vector.shape_cast %62 : vector<1x32xi1> to vector<1x32xi1>
    %65 = vector.broadcast %64 : vector<1x32xi1> to vector<32x32xi1>
    %66 = vector.broadcast %63 : bf16 to vector<32x32xbf16>
    %67 = arith.select %65, %60, %66 : vector<32x32xi1>, vector<32x32xbf16>
    %c0_33 = arith.constant 0 : index
    %c32_34 = arith.constant 32 : index
    %68 = vector.load %arg7[%c0_33, %c32_34] : memref<64x96xbf16, #tpu.memory_space<vmem>>, vector<64x32xbf16>
    %cst_35 = arith.constant dense<0.000000e+00> : vector<64x32xf32>
    %69 = tpu.matmul %68, %67, %cst_35 {dimension_numbers = #tpu.dot_dimension_numbers<[1], [0], [0], [1], [0, 0, 1, 1], [], []>} : vector<64x32xbf16>, vector<32x32xbf16>, vector<64x32xf32> -> vector<64x32xf32>
    %70 = arith.addf %59, %69 : vector<64x32xf32>
    %c0_36 = arith.constant 0 : index
    %c64_37 = arith.constant 64 : index
    %71 = vector.load %arg7[%c0_36, %c64_37] : memref<64x96xbf16, #tpu.memory_space<vmem>>, vector<64x32xbf16>
    %cst_38 = arith.constant dense<0.000000e+00> : vector<64x32xf32>
    %72 = tpu.matmul %71, %48, %cst_38 {dimension_numbers = #tpu.dot_dimension_numbers<[1], [0], [0], [1], [0, 0, 1, 1], [], []>} : vector<64x32xbf16>, vector<32x32xbf16>, vector<64x32xf32> -> vector<64x32xf32>
    %73 = arith.addf %70, %72 : vector<64x32xf32>
    %74 = vector.broadcast %47 : vector<64x1xf32> to vector<64x32xf32>
    %75 = arith.addf %73, %74 : vector<64x32xf32>
    %76 = vector.extract_strided_slice %75 {offsets = [0, 0], sizes = [32, 32], strides = [1, 1]} : vector<64x32xf32> to vector<32x32xf32>
    %77 = arith.negf %76 : vector<32x32xf32>
    %78 = math.exp %77 : vector<32x32xf32>
    %cst_39 = arith.constant 1.000000e+00 : f32
    %79 = vector.broadcast %cst_39 : f32 to vector<32x32xf32>
    %80 = arith.addf %79, %78 : vector<32x32xf32>
    %81 = arith.divf %79, %80 : vector<32x32xf32>
    %82 = vector.extract_strided_slice %75 {offsets = [32, 0], sizes = [32, 32], strides = [1, 1]} : vector<64x32xf32> to vector<32x32xf32>
    %83 = arith.subf %82, %46 : vector<32x32xf32>
    %84 = arith.mulf %81, %83 : vector<32x32xf32>
    %85 = arith.addf %46, %84 : vector<32x32xf32>
    %c0_40 = arith.constant 0 : index
    %c0_41 = arith.constant 0 : index
    %86 = vector.load %arg9[%c0_40, %c0_41] : memref<32x32xbf16, #tpu.memory_space<vmem>>, vector<32x32xbf16>
    %87 = arith.truncf %85 : vector<32x32xf32> to vector<32x32xbf16>
    %cst_42 = arith.constant dense<0.000000e+00> : vector<32x32xf32>
    %88 = tpu.matmul %86, %87, %cst_42 {dimension_numbers = #tpu.dot_dimension_numbers<[1], [0], [0], [1], [0, 0, 1, 1], [], []>} : vector<32x32xbf16>, vector<32x32xbf16>, vector<32x32xf32> -> vector<32x32xf32>
    %c0_43 = arith.constant 0 : index
    %c0_44 = arith.constant 0 : index
    %89 = vector.load %arg10[%c0_43, %c0_44] : memref<32x1xf32, #tpu.memory_space<vmem>>, vector<32x1xf32>
    %90 = vector.broadcast %89 : vector<32x1xf32> to vector<32x32xf32>
    %91 = arith.addf %88, %90 : vector<32x32xf32>
    %cst_45 = arith.constant 0.000000e+00 : f32
    %92 = vector.broadcast %cst_45 : f32 to vector<32x32xf32>
    %93 = arith.maximumf %91, %92 : vector<32x32xf32>
    %c0_46 = arith.constant 0 : index
    %c0_47 = arith.constant 0 : index
    %94 = vector.load %arg11[%c0_46, %c0_47] : memref<32x32xbf16, #tpu.memory_space<vmem>>, vector<32x32xbf16>
    %95 = arith.truncf %93 : vector<32x32xf32> to vector<32x32xbf16>
    %cst_48 = arith.constant dense<0.000000e+00> : vector<32x32xf32>
    %96 = tpu.matmul %94, %95, %cst_48 {dimension_numbers = #tpu.dot_dimension_numbers<[1], [0], [0], [1], [0, 0, 1, 1], [], []>} : vector<32x32xbf16>, vector<32x32xbf16>, vector<32x32xf32> -> vector<32x32xf32>
    %c0_49 = arith.constant 0 : index
    %c0_50 = arith.constant 0 : index
    %97 = vector.load %arg12[%c0_49, %c0_50] : memref<32x1xf32, #tpu.memory_space<vmem>>, vector<32x1xf32>
    %98 = vector.broadcast %97 : vector<32x1xf32> to vector<32x32xf32>
    %99 = arith.addf %96, %98 : vector<32x32xf32>
    %cst_51 = arith.constant 0.000000e+00 : f32
    %100 = vector.broadcast %cst_51 : f32 to vector<32x32xf32>
    %101 = arith.maximumf %99, %100 : vector<32x32xf32>
    %c0_52 = arith.constant 0 : index
    %c0_53 = arith.constant 0 : index
    %102 = vector.load %arg13[%c0_52, %c0_53] : memref<32x32xbf16, #tpu.memory_space<vmem>>, vector<32x32xbf16>
    %103 = arith.truncf %101 : vector<32x32xf32> to vector<32x32xbf16>
    %cst_54 = arith.constant dense<0.000000e+00> : vector<32x32xf32>
    %104 = tpu.matmul %102, %103, %cst_54 {dimension_numbers = #tpu.dot_dimension_numbers<[1], [0], [0], [1], [0, 0, 1, 1], [], []>} : vector<32x32xbf16>, vector<32x32xbf16>, vector<32x32xf32> -> vector<32x32xf32>
    %c0_55 = arith.constant 0 : index
    %c0_56 = arith.constant 0 : index
    %105 = vector.load %arg14[%c0_55, %c0_56] : memref<32x1xf32, #tpu.memory_space<vmem>>, vector<32x1xf32>
    %106 = vector.broadcast %105 : vector<32x1xf32> to vector<32x32xf32>
    %107 = arith.addf %104, %106 : vector<32x32xf32>
    %c0_57 = arith.constant 0 : index
    %c0_58 = arith.constant 0 : index
    %108 = vector.load %arg15[%c0_57, %c0_58] : memref<32x32xf32, #tpu.memory_space<vmem>>, vector<32x32xf32>
    tpu.vector_store %arg15[%c0_57, %c0_58], %107 {strides = array<i32>} : memref<32x32xf32, #tpu.memory_space<vmem>>, vector<32x32xf32>,
    return
  }
  func.func @transform_0(%arg0: i32) -> (i32, i32) {
    %c0_i32 = arith.constant 0 : i32
    %c0_i32_0 = arith.constant 0 : i32
    return %c0_i32, %arg0 : i32, i32
  }
  func.func @transform_1(%arg0: i32) -> (i32, i32) {
    %c0_i32 = arith.constant 0 : i32
    %c0_i32_0 = arith.constant 0 : i32
    return %c0_i32, %arg0 : i32, i32
  }
  func.func @transform_2(%arg0: i32) -> (i32, i32) {
    %c0_i32 = arith.constant 0 : i32
    %c0_i32_0 = arith.constant 0 : i32
    %c0_i32_1 = arith.constant 0 : i32
    return %c0_i32, %c0_i32_0 : i32, i32
  }
  func.func @transform_3(%arg0: i32) -> (i32, i32) {
    %c0_i32 = arith.constant 0 : i32
    %c0_i32_0 = arith.constant 0 : i32
    %c0_i32_1 = arith.constant 0 : i32
    return %c0_i32, %c0_i32_0 : i32, i32
  }
  func.func @transform_4(%arg0: i32) -> (i32, i32) {
    %c0_i32 = arith.constant 0 : i32
    %c0_i32_0 = arith.constant 0 : i32
    %c0_i32_1 = arith.constant 0 : i32
    return %c0_i32, %c0_i32_0 : i32, i32
  }
  func.func @transform_5(%arg0: i32) -> (i32, i32) {
    %c0_i32 = arith.constant 0 : i32
    %c0_i32_0 = arith.constant 0 : i32
    %c0_i32_1 = arith.constant 0 : i32
    return %c0_i32, %c0_i32_0 : i32, i32
  }
  func.func @transform_6(%arg0: i32) -> (i32, i32) {
    %c0_i32 = arith.constant 0 : i32
    %c0_i32_0 = arith.constant 0 : i32
    %c0_i32_1 = arith.constant 0 : i32
    return %c0_i32, %c0_i32_0 : i32, i32
  }
  func.func @transform_7(%arg0: i32) -> (i32, i32) {
    %c0_i32 = arith.constant 0 : i32
    %c0_i32_0 = arith.constant 0 : i32
    %c0_i32_1 = arith.constant 0 : i32
    return %c0_i32, %c0_i32_0 : i32, i32
  }
  func.func @transform_8(%arg0: i32) -> (i32, i32) {
    %c0_i32 = arith.constant 0 : i32
    %c0_i32_0 = arith.constant 0 : i32
    %c0_i32_1 = arith.constant 0 : i32
    return %c0_i32, %c0_i32_0 : i32, i32
  }
  func.func @transform_9(%arg0: i32) -> (i32, i32) {
    %c0_i32 = arith.constant 0 : i32
    %c0_i32_0 = arith.constant 0 : i32
    %c0_i32_1 = arith.constant 0 : i32
    return %c0_i32, %c0_i32_0 : i32, i32
  }
  func.func @transform_10(%arg0: i32) -> (i32, i32) {
    %c0_i32 = arith.constant 0 : i32
    %c0_i32_0 = arith.constant 0 : i32
    %c0_i32_1 = arith.constant 0 : i32
    return %c0_i32, %c0_i32_0 : i32, i32
  }
  func.func @transform_11(%arg0: i32) -> (i32, i32) {
    %c0_i32 = arith.constant 0 : i32
    %c0_i32_0 = arith.constant 0 : i32
    %c0_i32_1 = arith.constant 0 : i32
    return %c0_i32, %c0_i32_0 : i32, i32
  }
  func.func @transform_12(%arg0: i32) -> (i32, i32) {
    %c0_i32 = arith.constant 0 : i32
    %c0_i32_0 = arith.constant 0 : i32
    %c0_i32_1 = arith.constant 0 : i32
    return %c0_i32, %c0_i32_0 : i32, i32
  }
  func.func @transform_13(%arg0: i32) -> (i32, i32) {
    %c0_i32 = arith.constant 0 : i32
    %c0_i32_0 = arith.constant 0 : i32
    %c0_i32_1 = arith.constant 0 : i32
    return %c0_i32, %c0_i32_0 : i32, i32
  }
  func.func @transform_14(%arg0: i32) -> (i32, i32) {
    %c0_i32 = arith.constant 0 : i32
    %c0_i32_0 = arith.constant 0 : i32
    return %c0_i32, %arg0 : i32, i32
  }
}

</mosaic_0001>

<bundles_post_ra>
// kernel: tile.9
= control target key start
LH: loop header
LB: loop body
LE: loop exit
PB: predicated region body
PF: predicated region fallthrough
CT: control target
= control target key end

     0   :  { %vm7_vm0 = vcmask 130048   ;;  %vm13_vm1 = vcmask 261248   ;;  %s39_s0 = inlined_call_operand.vmem [shape: s32[2,16], index: 0, kind: input, shape index: {}]   ;;  %s40_s1 = inlined_call_operand.vmem [shape: s32[1,32], index: 1, kind: output, shape index: {}]  }
   0x1   :  { %v4_v0 = vld [vmem:[%s39_s0] sm:$0x3]  ;;  %s22_s0 = smov 16  }
   0x2   :  { %5 = vst [vmem:[#allocation1] sm:$0x3] %v4_v0 }
   0x9   :  { %v10_v1 = vld [vmem:[#allocation1 + $0x1] sm:$0x1]   ;;  %v6_v2 = vld [vmem:[#allocation1] sm:$0x1]  }
   0xa   :  { %11 = vrot.lane.b32.xlu0 %v10_v1, %s22_s0  ;;  %8 = vst.msk [vmem:[#allocation0] sm:$0x1] %vm7_vm0, %v6_v2  }
  0x7c   :  { %v12_v3 = vpop.permute.xlu0 %11  }
  0x7d   :  { %14 = vst.msk [vmem:[#allocation0] sm:$0x1] %vm13_vm1, %v12_v3  }
  0x84   :  { %v17_v4 = vld [vmem:[#allocation0] sm:$0x1] }
  0x85   :  { %20 = vst [vmem:[%s40_s1] sm:$0x1] %v17_v4 }

// kernel: _lambda_.1
= control target key start
LH: loop header
LB: loop body
LE: loop exit
PB: predicated region body
PF: predicated region fallthrough
CT: control target
= control target key end

     0   :  { %vm98_vm0 = vcmask 1041408   ;;  %v1390_v1 = vmov 0   ;;  %vm91_vm3 = vcmask 31744   ;;  %s1391_s25 = smov 126   ;;  %s1392_s26 = smov 127   ;;  %vm133_vm8 = vcmask 257024   ;;  %s2037_s0 = inlined_call_operand.vmem [shape: f32[4,32], index: 0, kind: input, shape index: {}]   ;;  %s2038_s3 = inlined_call_operand.vmem [shape: f32[32,1], index: 3, kind: input, shape index: {}]   ;;  %s2039_s1 = inlined_call_operand.vmem [shape: s32[1,32], index: 1, kind: input, shape index: {}]   ;;  %s2040_s2 = inlined_call_operand.vmem [shape: bf16[32,4], index: 2, kind: input, shape index: {}]   ;;  %s2041_s4 = inlined_call_operand.vmem [shape: bf16[64,96], index: 4, kind: input, shape index: {}]   ;;  %s2042_s5 = inlined_call_operand.vmem [shape: f32[64,1], index: 5, kind: input, shape index: {}]   ;;  %s2043_s6 = inlined_call_operand.vmem [shape: bf16[64,96], index: 6, kind: input, shape index: {}]   ;;  %s2044_s7 = inlined_call_operand.vmem [shape: f32[64,1], index: 7, kind: input, shape index: {}]   ;;  %s2045_s9 = inlined_call_operand.vmem [shape: f32[32,1], index: 9, kind: input, shape index: {}]   ;;  %s2046_s11 = inlined_call_operand.vmem [shape: f32[32,1], index: 11, kind: input, shape index: {}]   ;;  %s2047_s13 = inlined_call_operand.vmem [shape: f32[32,1], index: 13, kind: input, shape index: {}]   ;;  %s2048_s8 = inlined_call_operand.vmem [shape: bf16[32,32], index: 8, kind: input, shape index: {}]   ;;  %s2049_s10 = inlined_call_operand.vmem [shape: bf16[32,32], index: 10, kind: input, shape index: {}]   ;;  %s2050_s12 = inlined_call_operand.vmem [shape: bf16[32,32], index: 12, kind: input, shape index: {}]   ;;  %s2051_s14 = inlined_call_operand.vmem [shape: f32[32,32], index: 14, kind: output, shape index: {}]  }
   0x1   :  { %v50_v0 = vld [vmem:[%s2037_s0] sm:$0xf]  ;;  %1356 = vset.pattern.permute.xlu1 %v1390_v1  ;;  %1355 = vset.pattern.permute.xlu0 %v1390_v1  ;;  %v59_v4 = vld [vmem:[%s2038_s3 + $0x10] sm:$0xff]  ;;  %v58_v12 = vld [vmem:[%s2038_s3 + $0x8] sm:$0xff]  ;;  %vm151_vm9 = vcmask 1031168   ;;  %v1519_v25 = vunpack.c.l.b16 %v1390_v1  ;;  %v1522_v27 = vunpack.c.h.b16 %v1390_v1  ;;  %vm181_vm13 = vcmask 1039360  }
   0x2   :  { %v57_v2 = vld [vmem:[%s2038_s3] sm:$0xff]  ;;  %v51_v3 = vpack.c.bf16 %v50_v0, %v50_v0  ;;  %1357 = vset.pattern.permute.xlu2 %v1390_v1  ;;  %73 = vperm.xlu0 %1355, %v59_v4   ;;  %v60_v13 = vld [vmem:[%s2038_s3 + $0x18] sm:$0xff]  ;;  %v1329_v16 = vld [vmem:[%s2040_s2 + $0x8] sm:$0xff]  ;;  %s1394_s3 = smov 1   ;;  %s1395_s15 = smov 64  }
   0x3   :  { %63 = vperm.xlu1 %1356, %v57_v2   ;;  %v1491_v5 = vld [vmem:[%s2039_s1] sm:$0x1]  ;;  %s1396_s18 = smov 96   ;;  %v1332_v33 = vld [vmem:[%s2041_s4 + $0x10] sm:$0xff]  ;;  %s1397_s17 = smov 125  }
   0x4   :  { %v100_v6 = vsel %vm98_vm0, %v51_v3, 0  ;;  %v1328_v7 = vld [vmem:[%s2040_s2] sm:$0xff]  ;;  %vm142_vm1 = vcmp.ge.s32.totalorder %v1491_v5, 2  ;;  %vm172_vm2 = vcmp.ge.s32.totalorder %v1491_v5, 1  ;;  %s1393_s2 = smov 2   ;;  %s1398_s0 = smov 122  }
   0x5   :  { %109 = vmatpush.bf16.msra.mxu0 %v100_v6  ;;  %v143_v8 = vsel %vm142_vm1, 1, %v1390_v1  ;;  %v173_v9 = vsel %vm172_vm2, 1, %v1390_v1  ;;  %vm251_vm1 = vcmask 261120   ;;  %vm317_vm2 = vcmask 15360   ;;  %s1400_s21 = smov 6  }
   0x6   :  { %v144_v10 = vperm.slane %v143_v8, 0  ;;  %v174_v11 = vperm.slane %v173_v9, 0 }
   0x8   :  { %1232 = vmatmul.msk.bf16.vlgmr.msra.gmra.mxu0 %vm91_vm3, %v1328_v7  ;;  %vm145_vm4 = vcmp.eq.s32.totalorder %v144_v10, 1  ;;  %vm175_vm6 = vcmp.eq.s32.totalorder %v174_v11, 1 }
   0x9   :  { %vm146_vm5 = vmpackc.low %vm145_vm4, %vm145_vm4  ;;  %vm618_vm4 = vcmp.ge.s32.totalorder %v1491_v5, 3 }
   0xa   :  { %v147_v14 = vsel %vm146_vm5, 65537, %v1390_v1  ;;  %78 = vperm.xlu0 %1355, %v60_v13   ;;  %vm176_vm7 = vmpackc.low %vm175_vm6, %vm175_vm6  ;;  %vm588_vm5 = vcmp.ge.s32.totalorder %v1491_v5, 6  ;;  %v127_v5 = vld [vmem:[%s2042_s5 + $0x30] sm:$0xff] }
   0xb   :  { %68 = vperm.xlu1 %1356, %v58_v12   ;;  %148 = vrot.lane.b32.xlu2 %v147_v14, %s1391_s25  ;;  %v177_v15 = vsel %vm176_vm7, 65537, %v1390_v1 }
  0x13   :  { %178 = vrot.lane.b32.xlu2 %v177_v15, %s1392_s26 }
  0x18   :  { %1233 = vmatmul.msk.bf16.gmra.mxu0 %vm91_vm3, %v1329_v16  ;;  %vm246_vm3 = vcmask 7168  }
  0x65   :  { %v149_v19 = vpop.permute.xlu2 %148 }
  0x66   :  { %v150_v21 = vrot.slane %v149_v19, 4 }
  0x68   :  { %v152_v23 = vsel %vm151_vm9, %v150_v21, %v149_v19 }
  0x69   :  { %v153_v28 = vunpack.c.l.b16 %v152_v23  ;;  %v154_v29 = vunpack.c.h.b16 %v152_v23 }
  0x6b   :  { %vm157_vm10 = vcmp.ne.s32.totalorder %v153_v28, %v1519_v25  ;;  %vm158_vm11 = vcmp.ne.s32.totalorder %v154_v29, %v1522_v27 }
  0x6c   :  { %vm1531_vm12 = vmpackc.low %vm158_vm11, %vm157_vm10 }
  0x6d   :  { %v179_v36 = vpop.permute.xlu2 %178 }
  0x6e   :  { %v180_v40 = vrot.slane %v179_v36, 4 }
  0x70   :  { %v182_v47 = vsel %vm181_vm13, %v180_v40, %v179_v36  ;;  %v121_v36 = vld [vmem:[%s2042_s5] sm:$0xff] }
  0x71   :  { %v183_v53 = vunpack.c.l.b16 %v182_v47  ;;  %v184_v54 = vunpack.c.h.b16 %v182_v47  ;;  %v125_v40 = vld [vmem:[%s2042_s5 + $0x20] sm:$0xff] }
  0x73   :  { %vm187_vm14 = vcmp.ne.s32.totalorder %v183_v53, %v1519_v25  ;;  %vm188_vm15 = vcmp.ne.s32.totalorder %v184_v54, %v1522_v27 }
  0x74   :  { %v74_v32 = vpop.permute.xlu0 %73  ;;  %vm1553_vm0 = vmpackc.low %vm188_vm15, %vm187_vm14 }
  0x75   :  { %v64_v17 = vpop.permute.xlu1 %63 }
  0x7c   :  { %v79_v48 = vpop.permute.xlu0 %78 }
  0x7d   :  { %v69_v24 = vpop.permute.xlu1 %68 }
  0x85   :  { %v111_v18 = vpop.f32.mrf.mxu0 }
  0x86   :  { %v1513_v20 = vadd.f32 %v111_v18, %v64_v17 }
  0x88   :  { %v129_v22 = vpack.c.bf16 %v1513_v20, %v1513_v20 }
  0x8a   :  { %134 = vst.msk [vmem:[#allocation2 + $0x4] sm:$0xf] %vm133_vm8, %v129_v22  ;;  %v375_v61 = vunpack.c.l.b16 %v129_v22 }
  0x8d   :  { %v113_v26 = vpop.f32.mrf.mxu0 }
  0x8e   :  { %v1524_v30 = vadd.f32 %v113_v26, %v69_v24  ;;  %v1330_v26 = vld [vmem:[%s2041_s4] sm:$0xff] }
  0x90   :  { %v130_v31 = vpack.c.bf16 %v1524_v30, %v1524_v30 }
  0x91   :  { %v138_v35 = vld [vmem:[#allocation2] sm:$0xff] }
  0x92   :  { %135 = vst.msk [vmem:[#allocation2 + $0xc] sm:$0xf] %vm133_vm8, %v130_v31  ;;  %v160_v38 = vsel %vm1531_vm12, %v138_v35, 0  ;;  %v376_v59 = vunpack.c.l.b16 %v130_v31  ;;  %v190_v17 = vsel %vm1553_vm0, %v138_v35, 0  ;;  %v123_v35 = vld [vmem:[%s2042_s5 + $0x10] sm:$0xff] }
  0x93   :  { %v298_v43 = vunpack.c.h.b16 %v160_v38  ;;  %v297_v45 = vunpack.c.l.b16 %v160_v38  ;;  %v226_v22 = vunpack.c.l.b16 %v190_v17  ;;  %v227_v29 = vunpack.c.h.b16 %v190_v17  ;;  %v122_v38 = vld [vmem:[%s2042_s5 + $0x8] sm:$0xff] }
  0x94   :  { %v379_v0 = vpack.c.b16 %v376_v59, %v375_v61  ;;  %v619_v59 = vsel %vm618_vm4, 1, %v1390_v1  ;;  %vm597_vm4 = vcmask 998400  }
  0x95   :  { %v116_v34 = vpop.f32.mrf.mxu0  ;;  %v620_v61 = vperm.slane %v619_v59, 0 }
  0x96   :  { %v1535_v37 = vadd.f32 %v116_v34, %v74_v32  ;;  %v1331_v32 = vld [vmem:[%s2041_s4 + $0x8] sm:$0xff]  ;;  %v1586_v34 = vld [vmem:[%s2041_s4 + $0x18] sm:$0xff] }
  0x97   :  { %vm621_vm6 = vcmp.eq.s32.totalorder %v620_v61, 1 }
  0x98   :  { %v131_v39 = vpack.c.bf16 %v1535_v37, %v1535_v37  ;;  %vm622_vm9 = vmpackc.low %vm621_vm6, %vm621_vm6 }
  0x99   :  { %v139_v41 = vld [vmem:[#allocation2 + $0x8] sm:$0xff] }
  0x9a   :  { %v161_v42 = vsel %vm1531_vm12, %v139_v41, 0  ;;  %136 = vst.msk [vmem:[#allocation2 + $0x14] sm:$0xf] %vm133_vm8, %v131_v39  ;;  %v377_v56 = vunpack.c.l.b16 %v131_v39  ;;  %v191_v16 = vsel %vm1553_vm0, %v139_v41, 0  ;;  %v128_v39 = vld [vmem:[%s2042_s5 + $0x38] sm:$0xff] }
  0x9b   :  { %v300_v44 = vunpack.c.h.b16 %v161_v42  ;;  %v299_v46 = vunpack.c.l.b16 %v161_v42  ;;  %v228_v19 = vunpack.c.l.b16 %v191_v16  ;;  %v229_v28 = vunpack.c.h.b16 %v191_v16 }
  0x9d   :  { %v118_v49 = vpop.f32.mrf.mxu0  ;;  %v306_v50 = vpack.c.b16 %v300_v44, %v298_v43  ;;  %v305_v51 = vpack.c.b16 %v299_v46, %v297_v45  ;;  %v234_v24 = vpack.c.b16 %v228_v19, %v226_v22  ;;  %v235_v31 = vpack.c.b16 %v229_v28, %v227_v29 }
  0x9e   :  { %v1544_v52 = vadd.f32 %v118_v49, %v79_v48 }
  0x9f   :  { %311 = vrot.lane.b32.xlu0 %v306_v50, %s1393_s2  ;;  %309 = vrot.lane.b32.xlu2 %v305_v51, %s1393_s2 }
  0xa0   :  { %v132_v55 = vpack.c.bf16 %v1544_v52, %v1544_v52 }
  0xa1   :  { %v140_v60 = vld [vmem:[#allocation2 + $0x10] sm:$0xff] }
  0xa2   :  { %137 = vst.msk [vmem:[#allocation2 + $0x1c] sm:$0xf] %vm133_vm8, %v132_v55  ;;  %v378_v57 = vunpack.c.l.b16 %v132_v55  ;;  %v162_v63 = vsel %vm1531_vm12, %v140_v60, 0  ;;  %v192_v2 = vsel %vm1553_vm0, %v140_v60, 0  ;;  %v589_v60 = vsel %vm588_vm5, 1, %v1390_v1 }
  0xa3   :  { %v302_v6 = vunpack.c.h.b16 %v162_v63  ;;  %v301_v7 = vunpack.c.l.b16 %v162_v63  ;;  %v231_v11 = vunpack.c.h.b16 %v192_v2  ;;  %v230_v21 = vunpack.c.l.b16 %v192_v2 }
  0xa4   :  { %v380_v58 = vpack.c.b16 %v378_v57, %v377_v56  ;;  %v590_v62 = vperm.slane %v589_v60, 0 }
  0xa6   :  { %401 = vmatpush.bf16.msra.mxu3 %v380_v58  ;;  %v124_v58 = vld [vmem:[%s2042_s5 + $0x18] sm:$0xff]  ;;  %vm591_vm7 = vcmp.eq.s32.totalorder %v590_v62, 1 }
  0xa7   :  { %vm592_vm10 = vmpackc.low %vm591_vm7, %vm591_vm7 }
  0xa8   :  { %v593_v2 = vsel %vm592_vm10, 65537, %v1390_v1 }
  0xa9   :  { %v141_v3 = vld [vmem:[#allocation2 + $0x18] sm:$0xff] }
  0xaa   :  { %402 = vmatpush.bf16.msra.mxu3 %v379_v0  ;;  %v163_v4 = vsel %vm1531_vm12, %v141_v3, 0  ;;  %v193_v8 = vsel %vm1553_vm0, %v141_v3, 0  ;;  %v623_v0 = vsel %vm622_vm9, 65537, %v1390_v1  ;;  %v126_v3 = vld [vmem:[%s2042_s5 + $0x28] sm:$0xff]  ;;  %vm627_vm0 = vcmask 1022976   ;;  %s1399_s5 = smov 3  }
  0xab   :  { %v304_v9 = vunpack.c.h.b16 %v163_v4  ;;  %v303_v10 = vunpack.c.l.b16 %v163_v4  ;;  %v233_v12 = vunpack.c.h.b16 %v193_v8  ;;  %v232_v18 = vunpack.c.l.b16 %v193_v8 }
  0xad   :  { %v308_v13 = vpack.c.b16 %v304_v9, %v302_v6  ;;  %v307_v14 = vpack.c.b16 %v303_v10, %v301_v7  ;;  %v237_v15 = vpack.c.b16 %v233_v12, %v231_v11  ;;  %v236_v23 = vpack.c.b16 %v232_v18, %v230_v21 }
  0xaf   :  { %315 = vrot.lane.b32.xlu1 %v308_v13, %s1393_s2  ;;  %313 = vrot.lane.b32.xlu0 %v307_v14, %s1393_s2 }
  0xb0   :  { %244 = vrot.lane.b32.xlu2 %v237_v15, %s1394_s3 }
  0xb7   :  { %242 = vrot.lane.b32.xlu1 %v236_v23, %s1394_s3  ;;  %238 = vrot.lane.b32.xlu0 %v234_v24, %s1394_s3 }
  0xb8   :  { %363 = vrot.lane.b32.xlu2 %v1330_v26, %s1395_s15 }
  0xbf   :  { %240 = vrot.lane.b32.xlu1 %v235_v31, %s1394_s3  ;;  %214 = vrot.lane.b32.xlu0 %v1330_v26, %s1396_s18 }
  0xc0   :  { %216 = vrot.lane.b32.xlu2 %v1331_v32, %s1396_s18 }
  0xc7   :  { %365 = vrot.lane.b32.xlu1 %v1331_v32, %s1395_s15  ;;  %367 = vrot.lane.b32.xlu0 %v1332_v33, %s1395_s15 }
  0xc8   :  { %369 = vrot.lane.b32.xlu2 %v1586_v34, %s1395_s15 }
  0xcf   :  { %218 = vrot.lane.b32.xlu1 %v1332_v33, %s1396_s18  ;;  %220 = vrot.lane.b32.xlu0 %v1586_v34, %s1396_s18 }
  0xd0   :  { %449 = vperm.xlu2 %1357, %v124_v58  }
  0xd7   :  { %444 = vperm.xlu1 %1356, %v123_v35   ;;  %434 = vperm.xlu0 %1355, %v121_v36  }
  0xd8   :  { %464 = vperm.xlu2 %1357, %v127_v5  }
  0xdf   :  { %439 = vperm.xlu1 %1356, %v122_v38   ;;  %469 = vperm.xlu0 %1355, %v128_v39  }
  0xe0   :  { %459 = vperm.xlu2 %1357, %v126_v3  }
  0xe7   :  { %454 = vperm.xlu1 %1356, %v125_v40   ;;  %594 = vrot.lane.b32.xlu0 %v593_v2, %s1398_s0 }
  0xef   :  { %624 = vrot.lane.b32.xlu1 %v623_v0, %s1397_s17 }
  0xf9   :  { %v310_v41 = vpop.permute.xlu2 %309 }
 0x10a   :  { %v245_v42 = vpop.permute.xlu2 %244 }
 0x111   :  { %v312_v44 = vpop.permute.xlu0 %311 }
 0x112   :  { %v364_v43 = vpop.permute.xlu2 %363  ;;  %v318_v48 = vsel %vm317_vm2, %v310_v41, %v312_v44 }
 0x113   :  { %1258 = vmatmul.msk.bf16.vlgmr.msra.gmra.mxu3 %vm251_vm1, %v364_v43 }
 0x11a   :  { %v217_v57 = vpop.permute.xlu2 %216 }
 0x121   :  { %v316_v45 = vpop.permute.xlu1 %315  ;;  %v314_v46 = vpop.permute.xlu0 %313 }
 0x122   :  { %v319_v47 = vsel %vm317_vm2, %v314_v46, %v316_v45  ;;  %v370_v6 = vpop.permute.xlu2 %369 }
 0x123   :  { %340 = vmatpush.bf16.msra.mxu2 %v319_v47 }
 0x127   :  { %341 = vmatpush.bf16.msra.mxu2 %v318_v48 }
 0x129   :  { %v243_v49 = vpop.permute.xlu1 %242  ;;  %v239_v51 = vpop.permute.xlu0 %238 }
 0x12a   :  { %1254 = vmatmul.msk.bf16.vlgmr.msra.gmra.mxu2 %vm251_vm1, %v1330_v26  ;;  %v248_v50 = vsel %vm246_vm3, %v243_v49, %v245_v42  ;;  %v450_v43 = vpop.permute.xlu2 %449 }
 0x12b   :  { %270 = vmatpush.bf16.msra.mxu1 %v248_v50 }
 0x131   :  { %v241_v53 = vpop.permute.xlu1 %240  ;;  %v215_v55 = vpop.permute.xlu0 %214 }
 0x132   :  { %v247_v54 = vsel %vm246_vm3, %v239_v51, %v241_v53  ;;  %v1650_v0 = vpop.permute.xlu2 %464 }
 0x133   :  { %271 = vmatpush.bf16.msra.mxu1 %v247_v54 }
 0x136   :  { %1250 = vmatmul.msk.bf16.vlgmr.msra.gmra.mxu1 %vm251_vm1, %v215_v55 }
 0x139   :  { %v366_v56 = vpop.permute.xlu1 %365  ;;  %v368_v63 = vpop.permute.xlu0 %367 }
 0x13a   :  { %1255 = vmatmul.msk.bf16.gmra.mxu2 %vm251_vm1, %v1331_v32  ;;  %1259 = vmatmul.msk.bf16.gmra.mxu3 %vm251_vm1, %v366_v56 }
 0x141   :  { %v219_v4 = vpop.permute.xlu1 %218  ;;  %v221_v7 = vpop.permute.xlu0 %220 }
 0x146   :  { %1251 = vmatmul.msk.bf16.gmra.mxu1 %vm251_vm1, %v217_v57 }
 0x149   :  { %v445_v12 = vpop.permute.xlu1 %444  ;;  %v435_v15 = vpop.permute.xlu0 %434 }
 0x14a   :  { %1256 = vmatmul.msk.bf16.gmra.mxu2 %vm251_vm1, %v1332_v33  ;;  %1260 = vmatmul.msk.bf16.gmra.mxu3 %vm251_vm1, %v368_v63 }
 0x151   :  { %v440_v24 = vpop.permute.xlu1 %439  ;;  %v1641_v56 = vpop.permute.xlu0 %469 }
 0x156   :  { %1252 = vmatmul.msk.bf16.gmra.mxu1 %vm251_vm1, %v219_v4 }
 0x159   :  { %v455_v50 = vpop.permute.xlu1 %454 }
 0x15a   :  { %1257 = vmatmul.msk.bf16.gmra.mxu2 %vm251_vm1, %v1586_v34  ;;  %1261 = vmatmul.msk.bf16.gmra.mxu3 %vm251_vm1, %v370_v6 }
 0x166   :  { %1253 = vmatmul.msk.bf16.gmra.mxu1 %vm251_vm1, %v221_v7 }
 0x196   :  { %v404_v1 = vpop.f32.mrf.mxu3 }
 0x19e   :  { %v406_v10 = vpop.f32.mrf.mxu3 }
 0x1ad   :  { %v343_v8 = vpop.f32.mrf.mxu2 }
 0x1b3   :  { %v273_v9 = vpop.f32.mrf.mxu1 }
 0x1b4   :  { %v344_v11 = vadd.f32 %v343_v8, %v273_v9 }
 0x1b5   :  { %v345_v13 = vpop.f32.mrf.mxu2 }
 0x1b6   :  { %v424_v14 = vadd.f32 %v404_v1, %v344_v11  ;;  %v625_v1 = vpop.permute.xlu1 %624 }
 0x1b8   :  { %v472_v16 = vadd.f32 %v435_v15, %v424_v14  ;;  %v626_v15 = vrot.slane %v625_v1, 4 }
 0x1ba   :  { %v1262_v17 = vmul.f32 -1.442695, %v472_v16  ;;  %v595_v16 = vpop.permute.xlu0 %594 }
 0x1bb   :  { %v275_v18 = vpop.f32.mrf.mxu1 }
 0x1bc   :  { %1358 = vpow2.f32 %v1262_v17  ;;  %v346_v19 = vadd.f32 %v345_v13, %v275_v18 }
 0x1bd   :  { %v348_v21 = vpop.f32.mrf.mxu2  ;;  %v409_v22 = vpop.f32.mrf.mxu3 }
 0x1be   :  { %v425_v23 = vadd.f32 %v406_v10, %v346_v19 }
 0x1c0   :  { %v473_v26 = vadd.f32 %v440_v24, %v425_v23 }
 0x1c2   :  { %v1359_v28 = vpop.eup %1358  ;;  %v1263_v29 = vmul.f32 -1.442695, %v473_v26 }
 0x1c3   :  { %v492_v31 = vadd.f32 1.0, %v1359_v28  ;;  %v278_v32 = vpop.f32.mrf.mxu1 }
 0x1c4   :  { %1360 = vpow2.f32 %v1263_v29  ;;  %v349_v33 = vadd.f32 %v348_v21, %v278_v32  ;;  %v596_v29 = vrot.slane %v595_v16, 4 }
 0x1c5   :  { %1362 = vrcp.f32 %v492_v31  ;;  %v350_v34 = vpop.f32.mrf.mxu2  ;;  %v411_v35 = vpop.f32.mrf.mxu3  ;;  %v507_v5 = vand.u32 2147483648, %v492_v31  ;;  %vm501_vm12 = vweird.f32 %v492_v31  ;;  %v505_v3 = vand.u32 2147483647, %v492_v31 }
 0x1c6   :  { %v426_v36 = vadd.f32 %v409_v22, %v349_v33 }
 0x1c7   :  { %v508_v11 = vor.u32 1.1754944e-38, %v507_v5  ;;  %vm506_vm14 = vcmp.eq.f32.partialorder %v505_v3, 8.507059e+37 }
 0x1c8   :  { %v474_v38 = vadd.f32 %v445_v12, %v426_v36  ;;  %v628_v36 = vsel %vm627_vm0, %v626_v15, %v625_v1 }
 0x1ca   :  { %v1361_v39 = vpop.eup %1360  ;;  %v1264_v40 = vmul.f32 -1.442695, %v474_v38 }
 0x1cb   :  { %v1363_v41 = vpop.eup %1362  ;;  %v1638_v42 = vadd.f32 1.0, %v1361_v39  ;;  %v280_v44 = vpop.f32.mrf.mxu1 }
 0x1cc   :  { %v497_v45 = vmul.f32 %v1363_v41, %v492_v31  ;;  %1364 = vpow2.f32 %v1264_v40  ;;  %v351_v46 = vadd.f32 %v350_v34, %v280_v44  ;;  %vm502_vm11 = vweird.f32 %v1363_v41 }
 0x1cd   :  { %1366 = vrcp.f32 %v1638_v42  ;;  %v353_v47 = vpop.f32.mrf.mxu2  ;;  %v414_v51 = vpop.f32.mrf.mxu3  ;;  %vm1652_vm13 = vmor %vm501_vm12, %vm502_vm11  ;;  %vm516_vm2 = vweird.f32 %v1638_v42  ;;  %v522_v28 = vand.u32 2147483648, %v1638_v42  ;;  %v520_v33 = vand.u32 2147483647, %v1638_v42 }
 0x1ce   :  { %v427_v48 = vadd.f32 %v411_v35, %v351_v46  ;;  %v498_v49 = vsub.f32 1.0, %v497_v45  ;;  %v460_v35 = vpop.permute.xlu2 %459  ;;  %v598_v44 = vsel %vm597_vm4, %v596_v29, %v595_v16 }
 0x1cf   :  { %vm521_vm5 = vcmp.eq.f32.partialorder %v520_v33, 8.507059e+37 }
 0x1d0   :  { %v475_v53 = vadd.f32 %v450_v43, %v427_v48  ;;  %v499_v54 = vmul.f32 %v1363_v41, %v498_v49  ;;  %v629_v48 = vunpack.c.l.b16 %v628_v36  ;;  %v630_v49 = vunpack.c.h.b16 %v628_v36 }
 0x1d2   :  { %v1365_v55 = vpop.eup %1364  ;;  %v1265_v57 = vmul.f32 -1.442695, %v475_v53  ;;  %v500_v63 = vadd.f32 %v1363_v41, %v499_v54  ;;  %vm633_vm9 = vcmp.ne.s32.totalorder %v629_v48, %v1519_v25  ;;  %vm634_vm10 = vcmp.ne.s32.totalorder %v630_v49, %v1522_v27 }
 0x1d3   :  { %v1643_v58 = vpop.eup %1366  ;;  %v1645_v59 = vadd.f32 1.0, %v1365_v55  ;;  %v283_v60 = vpop.f32.mrf.mxu1 }
 0x1d4   :  { %v512_v61 = vmul.f32 %v1643_v58, %v1638_v42  ;;  %1368 = vpow2.f32 %v1265_v57  ;;  %v354_v62 = vadd.f32 %v353_v47, %v283_v60  ;;  %v504_v9 = vsel %vm1652_vm13, %v1363_v41, %v500_v63 }
 0x1d5   :  { %1370 = vrcp.f32 %v1645_v59  ;;  %v355_v7 = vpop.f32.mrf.mxu2  ;;  %v416_v12 = vpop.f32.mrf.mxu3  ;;  %v509_v19 = vsel %vm506_vm14, %v508_v11, %v504_v9  ;;  %vm517_vm15 = vweird.f32 %v1643_v58  ;;  %v523_v41 = vor.u32 1.1754944e-38, %v522_v28 }
 0x1d6   :  { %v428_v2 = vadd.f32 %v414_v51, %v354_v62  ;;  %v513_v4 = vsub.f32 1.0, %v512_v61  ;;  %vm518_vm3 = vmor %vm516_vm2, %vm517_vm15  ;;  %v599_v57 = vunpack.c.l.b16 %v598_v44  ;;  %vm531_vm7 = vweird.f32 %v1645_v59 }
 0x1d7   :  { %v537_v60 = vand.u32 2147483648, %v1645_v59  ;;  %v535_v63 = vand.u32 2147483647, %v1645_v59  ;;  %vm1715_vm15 = vmpackc.low %vm634_vm10, %vm633_vm9 }
 0x1d8   :  { %v476_v8 = vadd.f32 %v455_v50, %v428_v2  ;;  %v514_v10 = vmul.f32 %v1643_v58, %v513_v4  ;;  %vm603_vm12 = vcmp.ne.s32.totalorder %v599_v57, %v1519_v25 }
 0x1d9   :  { %vm536_vm14 = vcmp.eq.f32.partialorder %v535_v63, 8.507059e+37 }
 0x1da   :  { %v1369_v13 = vpop.eup %1368  ;;  %v556_v14 = vsub.f32 %v476_v8, %v1513_v20  ;;  %v515_v26 = vadd.f32 %v1643_v58, %v514_v10  ;;  %v1800_v10 = vld [vmem:[%s2043_s6 + $0x18] sm:$0xff] }
 0x1db   :  { %v1660_v17 = vpop.eup %1370  ;;  %v1662_v18 = vadd.f32 1.0, %v1369_v13  ;;  %v285_v21 = vpop.f32.mrf.mxu1 }
 0x1dc   :  { %v527_v22 = vmul.f32 %v1660_v17, %v1645_v59  ;;  %v560_v23 = vmul.f32 %v556_v14, %v509_v19  ;;  %v356_v24 = vadd.f32 %v355_v7, %v285_v21  ;;  %v519_v40 = vsel %vm518_vm3, %v1643_v58, %v515_v26  ;;  %v575_v19 = vld [vmem:[%s2044_s7 + $0x38] sm:$0xff] }
 0x1dd   :  { %1372 = vrcp.f32 %v1662_v18  ;;  %v358_v43 = vpop.f32.mrf.mxu2  ;;  %v524_v46 = vsel %vm521_vm5, %v523_v41, %v519_v40  ;;  %v419_v47 = vpop.f32.mrf.mxu3  ;;  %vm532_vm6 = vweird.f32 %v1660_v17  ;;  %v600_v58 = vunpack.c.h.b16 %v598_v44 }
 0x1de   :  { %v1672_v31 = vadd.f32 %v560_v23, %v1513_v20  ;;  %v429_v32 = vadd.f32 %v416_v12, %v356_v24  ;;  %v528_v34 = vsub.f32 1.0, %v527_v22  ;;  %vm533_vm11 = vmor %vm531_vm7, %vm532_vm6  ;;  %v538_v59 = vor.u32 1.1754944e-38, %v537_v60 }
 0x1df   :  { %vm604_vm13 = vcmp.ne.s32.totalorder %v600_v58, %v1522_v27  ;;  %v550_v13 = vand.u32 2147483647, %v1662_v18  ;;  %v552_v14 = vand.u32 2147483648, %v1662_v18  ;;  %vm546_vm3 = vweird.f32 %v1662_v18 }
 0x1e0   :  { %v1680_v38 = vpack.c.bf16 %v1672_v31, %v1672_v31  ;;  %v477_v39 = vadd.f32 %v460_v35, %v429_v32  ;;  %v529_v20 = vmul.f32 %v1660_v17, %v528_v34  ;;  %vm1719_vm0 = vmpackc.low %vm604_vm13, %vm603_vm12  ;;  %vm692_vm6 = vcmask 23552  }
 0x1e1   :  { %vm551_vm5 = vcmp.eq.f32.partialorder %v550_v13, 8.507059e+37  ;;  %v569_v13 = vld [vmem:[%s2044_s7 + $0x8] sm:$0xff] }
 0x1e2   :  { %580 = vst.msk [vmem:[#allocation2 + $0x4] sm:$0xf] %vm133_vm8, %v1680_v38  ;;  %v557_v42 = vsub.f32 %v477_v39, %v1524_v30  ;;  %v530_v55 = vadd.f32 %v1660_v17, %v529_v20  ;;  %v820_v49 = vunpack.c.l.b16 %v1680_v38 }
 0x1e3   :  { %v1687_v45 = vpop.eup %1372  ;;  %v288_v50 = vpop.f32.mrf.mxu1 }
 0x1e4   :  { %v542_v51 = vmul.f32 %v1687_v45, %v1662_v18  ;;  %v561_v53 = vmul.f32 %v557_v42, %v524_v46  ;;  %v359_v54 = vadd.f32 %v358_v43, %v288_v50  ;;  %vm547_vm2 = vweird.f32 %v1687_v45 }
 0x1e5   :  { %v360_v1 = vpop.f32.mrf.mxu2  ;;  %v421_v12 = vpop.f32.mrf.mxu3  ;;  %vm1733_vm4 = vmor %vm546_vm3, %vm547_vm2 }
 0x1e6   :  { %v1696_v61 = vadd.f32 %v561_v53, %v1524_v30  ;;  %v430_v62 = vadd.f32 %v419_v47, %v359_v54  ;;  %v543_v5 = vsub.f32 1.0, %v542_v51  ;;  %v534_v30 = vsel %vm533_vm11, %v1660_v17, %v530_v55 }
 0x1e8   :  { %v1705_v2 = vpack.c.bf16 %v1696_v61, %v1696_v61  ;;  %v478_v3 = vadd.f32 %v1650_v0, %v430_v62  ;;  %v544_v4 = vmul.f32 %v1687_v45, %v543_v5  ;;  %v539_v0 = vsel %vm536_vm14, %v538_v59, %v534_v30 }
 0x1e9   :  { %v584_v9 = vld [vmem:[#allocation2] sm:$0xff] }
 0x1ea   :  { %581 = vst.msk [vmem:[#allocation2 + $0xc] sm:$0xf] %vm133_vm8, %v1705_v2  ;;  %v558_v6 = vsub.f32 %v478_v3, %v1535_v37  ;;  %v545_v11 = vadd.f32 %v1687_v45, %v544_v4  ;;  %v636_v16 = vsel %vm1715_vm15, %v584_v9, 0  ;;  %v1739_v21 = vsel %vm1719_vm0, %v584_v9, 0  ;;  %v1789_v9 = vld [vmem:[%s2043_s6 + $0x8] sm:$0xff] }
 0x1eb   :  { %v290_v8 = vpop.f32.mrf.mxu1  ;;  %v673_v26 = vunpack.c.h.b16 %v636_v16  ;;  %v672_v28 = vunpack.c.l.b16 %v636_v16  ;;  %v742_v33 = vunpack.c.l.b16 %v1739_v21  ;;  %v821_v48 = vunpack.c.l.b16 %v1705_v2  ;;  %v572_v16 = vld [vmem:[%s2044_s7 + $0x20] sm:$0xff] }
 0x1ec   :  { %v562_v25 = vmul.f32 %v558_v6, %v539_v0  ;;  %v361_v27 = vadd.f32 %v360_v1, %v290_v8  ;;  %v549_v18 = vsel %vm1733_vm4, %v1687_v45, %v545_v11  ;;  %v1779_v6 = vld [vmem:[%s2043_s6] sm:$0xff]  ;;  %v743_v7 = vunpack.c.h.b16 %v1739_v21  ;;  %v570_v11 = vld [vmem:[%s2044_s7 + $0x10] sm:$0xff] }
 0x1ed   :  { %v824_v53 = vpack.c.b16 %v821_v48, %v820_v49  ;;  %v1019_v21 = vld [vmem:[%s2045_s9] sm:$0xff] }
 0x1ee   :  { %v431_v15 = vadd.f32 %v421_v12, %v361_v27  ;;  %v1731_v17 = vadd.f32 %v562_v25, %v1535_v37  ;;  %v553_v37 = vor.u32 1.1754944e-38, %v552_v14  ;;  %v1805_v25 = vld [vmem:[%s2043_s6 + $0x10] sm:$0xff]  ;;  %v571_v27 = vld [vmem:[%s2044_s7 + $0x18] sm:$0xff]  ;;  %v568_v14 = vld [vmem:[%s2044_s7] sm:$0xff] }
 0x1ef   :  { %v574_v12 = vld [vmem:[%s2044_s7 + $0x30] sm:$0xff] }
 0x1f0   :  { %v479_v22 = vadd.f32 %v1641_v56, %v431_v15  ;;  %v578_v23 = vpack.c.bf16 %v1731_v17, %v1731_v17  ;;  %v554_v34 = vsel %vm551_vm5, %v553_v37, %v549_v18  ;;  %v573_v15 = vld [vmem:[%s2044_s7 + $0x28] sm:$0xff]  ;;  %v1021_v18 = vld [vmem:[%s2045_s9 + $0x10] sm:$0xff] }
 0x1f1   :  { %v585_v24 = vld [vmem:[#allocation2 + $0x8] sm:$0xff]  ;;  %v1090_v37 = vld [vmem:[%s2046_s11 + $0x10] sm:$0xff] }
 0x1f2   :  { %v559_v29 = vsub.f32 %v479_v22, %v1544_v52  ;;  %v637_v32 = vsel %vm1715_vm15, %v585_v24, 0  ;;  %v607_v56 = vsel %vm1719_vm0, %v585_v24, 0  ;;  %582 = vst.msk [vmem:[#allocation2 + $0x14] sm:$0xf] %vm133_vm8, %v578_v23  ;;  %v822_v45 = vunpack.c.l.b16 %v578_v23  ;;  %v1022_v22 = vld [vmem:[%s2045_s9 + $0x18] sm:$0xff]  ;;  %v1020_v24 = vld [vmem:[%s2045_s9 + $0x8] sm:$0xff] }
 0x1f3   :  { %v675_v35 = vunpack.c.h.b16 %v637_v32  ;;  %v674_v36 = vunpack.c.l.b16 %v637_v32  ;;  %v744_v39 = vunpack.c.l.b16 %v607_v56  ;;  %v745_v4 = vunpack.c.h.b16 %v607_v56  ;;  %v1091_v23 = vld [vmem:[%s2046_s11 + $0x18] sm:$0xff]  ;;  %v1159_v56 = vld [vmem:[%s2047_s13 + $0x10] sm:$0xff] }
 0x1f4   :  { %v563_v40 = vmul.f32 %v559_v29, %v554_v34  ;;  %v1088_v29 = vld [vmem:[%s2046_s11] sm:$0xff]  ;;  %v1160_v32 = vld [vmem:[%s2047_s13 + $0x18] sm:$0xff] }
 0x1f5   :  { %v681_v20 = vpack.c.b16 %v675_v35, %v673_v26  ;;  %v680_v41 = vpack.c.b16 %v674_v36, %v672_v28  ;;  %v750_v43 = vpack.c.b16 %v744_v39, %v742_v33  ;;  %v751_v1 = vpack.c.b16 %v745_v4, %v743_v7  ;;  %v1157_v26 = vld [vmem:[%s2047_s13] sm:$0xff]  ;;  %v1089_v28 = vld [vmem:[%s2046_s11 + $0x8] sm:$0xff] }
 0x1f6   :  { %v1755_v42 = vadd.f32 %v563_v40, %v1544_v52  ;;  %v1158_v33 = vld [vmem:[%s2047_s13 + $0x8] sm:$0xff] }
 0x1f7   :  { %686 = vrot.lane.b32.xlu1 %v681_v20, %s1399_s5  ;;  %684 = vrot.lane.b32.xlu0 %v680_v41, %s1399_s5 }
 0x1f8   :  { %754 = vrot.lane.b32.xlu2 %v750_v43, %s1400_s21  ;;  %v579_v44 = vpack.c.bf16 %v1755_v42, %v1755_v42 }
 0x1f9   :  { %v586_v52 = vld [vmem:[#allocation2 + $0x10] sm:$0xff] }
 0x1fa   :  { %583 = vst.msk [vmem:[#allocation2 + $0x1c] sm:$0xf] %vm133_vm8, %v579_v44  ;;  %v823_v46 = vunpack.c.l.b16 %v579_v44  ;;  %v608_v50 = vsel %vm1719_vm0, %v586_v52, 0  ;;  %v638_v51 = vsel %vm1715_vm15, %v586_v52, 0  ;;  %vm762_vm8 = vcmask 48128  }
 0x1fb   :  { %v746_v57 = vunpack.c.l.b16 %v608_v50  ;;  %v677_v60 = vunpack.c.h.b16 %v638_v51  ;;  %v676_v38 = vunpack.c.l.b16 %v638_v51  ;;  %v747_v0 = vunpack.c.h.b16 %v608_v50 }
 0x1fc   :  { %v825_v47 = vpack.c.b16 %v823_v46, %v822_v45 }
 0x1fe   :  { %846 = vmatpush.bf16.msrb.mxu2 %v825_v47 }
 0x201   :  { %v587_v54 = vld [vmem:[#allocation2 + $0x18] sm:$0xff] }
 0x202   :  { %847 = vmatpush.bf16.msrb.mxu2 %v824_v53  ;;  %v609_v55 = vsel %vm1719_vm0, %v587_v54, 0  ;;  %v639_v58 = vsel %vm1715_vm15, %v587_v54, 0 }
 0x203   :  { %v748_v62 = vunpack.c.l.b16 %v609_v55  ;;  %v679_v63 = vunpack.c.h.b16 %v639_v58  ;;  %v678_v5 = vunpack.c.l.b16 %v639_v58  ;;  %v749_v59 = vunpack.c.h.b16 %v609_v55 }
 0x205   :  { %v752_v2 = vpack.c.b16 %v748_v62, %v746_v57  ;;  %v683_v3 = vpack.c.b16 %v679_v63, %v677_v60  ;;  %v682_v30 = vpack.c.b16 %v678_v5, %v676_v38  ;;  %v753_v8 = vpack.c.b16 %v749_v59, %v747_v0 }
 0x207   :  { %758 = vrot.lane.b32.xlu1 %v752_v2, %s1400_s21  ;;  %690 = vrot.lane.b32.xlu0 %v683_v3, %s1399_s5 }
 0x208   :  { %688 = vrot.lane.b32.xlu2 %v682_v30, %s1399_s5 }
 0x20f   :  { %808 = vrot.lane.b32.xlu1 %v1779_v6, %s1395_s15  ;;  %756 = vrot.lane.b32.xlu0 %v751_v1, %s1400_s21 }
 0x210   :  { %760 = vrot.lane.b32.xlu2 %v753_v8, %s1400_s21 }
 0x217   :  { %662 = vrot.lane.b32.xlu1 %v1789_v9, %s1396_s18  ;;  %810 = vrot.lane.b32.xlu0 %v1789_v9, %s1395_s15 }
 0x218   :  { %660 = vrot.lane.b32.xlu2 %v1779_v6, %s1396_s18 }
 0x21f   :  { %814 = vrot.lane.b32.xlu1 %v1800_v10, %s1395_s15  ;;  %664 = vrot.lane.b32.xlu0 %v1805_v25, %s1396_s18 }
 0x220   :  { %812 = vrot.lane.b32.xlu2 %v1805_v25, %s1395_s15 }
 0x227   :  { %894 = vperm.xlu1 %1356, %v571_v27   ;;  %889 = vperm.xlu0 %1355, %v570_v11  }
 0x228   :  { %666 = vrot.lane.b32.xlu2 %v1800_v10, %s1396_s18 }
 0x22f   :  { %909 = vperm.xlu1 %1356, %v574_v12   ;;  %884 = vperm.xlu0 %1355, %v569_v13  }
 0x230   :  { %879 = vperm.xlu2 %1357, %v568_v14  }
 0x237   :  { %904 = vperm.xlu1 %1356, %v573_v15   ;;  %899 = vperm.xlu0 %1355, %v572_v16  }
 0x238   :  { %914 = vperm.xlu2 %1357, %v575_v19  }
 0x23f   :  { %1025 = vperm.xlu1 %1356, %v1019_v21   ;;  %1040 = vperm.xlu0 %1355, %v1022_v22  }
 0x240   :  { %1035 = vperm.xlu2 %1357, %v1021_v18  }
 0x247   :  { %1109 = vperm.xlu1 %1356, %v1091_v23   ;;  %1104 = vperm.xlu0 %1355, %v1090_v37  }
 0x248   :  { %1030 = vperm.xlu2 %1357, %v1020_v24  }
 0x24f   :  { %1163 = vperm.xlu1 %1356, %v1157_v26   ;;  %1099 = vperm.xlu0 %1355, %v1089_v28  }
 0x250   :  { %1094 = vperm.xlu2 %1357, %v1088_v29  }
 0x252   :  { %v755_v34 = vpop.permute.xlu2 %754 }
 0x257   :  { %1178 = vperm.xlu1 %1356, %v1160_v32   ;;  %1173 = vperm.xlu0 %1355, %v1159_v56  }
 0x258   :  { %1168 = vperm.xlu2 %1357, %v1158_v33  }
 0x262   :  { %v689_v35 = vpop.permute.xlu2 %688 }
 0x269   :  { %v687_v36 = vpop.permute.xlu1 %686  ;;  %v685_v39 = vpop.permute.xlu0 %684 }
 0x26a   :  { %v761_v40 = vpop.permute.xlu2 %760  ;;  %v693_v45 = vsel %vm692_vm6, %v685_v39, %v687_v36 }
 0x272   :  { %v661_v46 = vpop.permute.xlu2 %660 }
 0x279   :  { %v759_v20 = vpop.permute.xlu1 %758  ;;  %v691_v41 = vpop.permute.xlu0 %690 }
 0x27a   :  { %v694_v43 = vsel %vm692_vm6, %v689_v35, %v691_v41  ;;  %v764_v44 = vsel %vm762_vm8, %v759_v20, %v761_v40  ;;  %v813_v51 = vpop.permute.xlu2 %812 }
 0x27b   :  { %715 = vmatpush.bf16.msrb.mxu0 %v694_v43  ;;  %785 = vmatpush.bf16.msrb.mxu1 %v764_v44 }
 0x27f   :  { %716 = vmatpush.bf16.msrb.mxu0 %v693_v45 }
 0x281   :  { %v809_v47 = vpop.permute.xlu1 %808  ;;  %v757_v48 = vpop.permute.xlu0 %756 }
 0x282   :  { %1282 = vmatmul.msk.bf16.vlgmr.msrb.gmra.mxu0 %vm251_vm1, %v661_v46  ;;  %1290 = vmatmul.msk.bf16.vlgmr.msrb.gmra.mxu2 %vm251_vm1, %v809_v47  ;;  %v763_v52 = vsel %vm762_vm8, %v755_v34, %v757_v48  ;;  %v667_v54 = vpop.permute.xlu2 %666 }
 0x283   :  { %786 = vmatpush.bf16.msrb.mxu1 %v763_v52 }
 0x286   :  { %1286 = vmatmul.msk.bf16.vlgmr.msrb.gmra.mxu1 %vm251_vm1, %v1779_v6 }
 0x289   :  { %v663_v49 = vpop.permute.xlu1 %662  ;;  %v811_v50 = vpop.permute.xlu0 %810 }
 0x28a   :  { %v880_v0 = vpop.permute.xlu2 %879 }
 0x291   :  { %v665_v53 = vpop.permute.xlu0 %664  ;;  %v815_v55 = vpop.permute.xlu1 %814 }
 0x292   :  { %1283 = vmatmul.msk.bf16.gmra.mxu0 %vm251_vm1, %v663_v49  ;;  %1291 = vmatmul.msk.bf16.gmra.mxu2 %vm251_vm1, %v811_v50 }
 0x296   :  { %1287 = vmatmul.msk.bf16.gmra.mxu1 %vm251_vm1, %v1789_v9 }
 0x299   :  { %v890_v62 = vpop.permute.xlu0 %889  ;;  %v895_v18 = vpop.permute.xlu1 %894 }
 0x2a1   :  { %v885_v6 = vpop.permute.xlu0 %884  ;;  %v910_v47 = vpop.permute.xlu1 %909 }
 0x2a2   :  { %1284 = vmatmul.msk.bf16.gmra.mxu0 %vm251_vm1, %v665_v53  ;;  %1292 = vmatmul.msk.bf16.gmra.mxu2 %vm251_vm1, %v813_v51 }
 0x2a6   :  { %1288 = vmatmul.msk.bf16.gmra.mxu1 %vm251_vm1, %v1805_v25 }
 0x2b2   :  { %1285 = vmatmul.msk.bf16.gmra.mxu0 %vm251_vm1, %v667_v54  ;;  %1293 = vmatmul.msk.bf16.gmra.mxu2 %vm251_vm1, %v815_v55 }
 0x2b6   :  { %1289 = vmatmul.msk.bf16.gmra.mxu1 %vm251_vm1, %v1800_v10 }
 0x2ff   :  { %v718_v57 = vpop.f32.mrf.mxu0 }
 0x303   :  { %v788_v58 = vpop.f32.mrf.mxu1 }
 0x304   :  { %v789_v38 = vadd.f32 %v788_v58, %v718_v57 }
 0x305   :  { %v849_v60 = vpop.f32.mrf.mxu2 }
 0x306   :  { %v869_v4 = vadd.f32 %v849_v60, %v789_v38 }
 0x307   :  { %v720_v63 = vpop.f32.mrf.mxu0 }
 0x308   :  { %v917_v1 = vadd.f32 %v880_v0, %v869_v4 }
 0x30a   :  { %v1294_v11 = vmul.f32 -1.442695, %v917_v1  ;;  %v905_v1 = vpop.permute.xlu1 %904 }
 0x30b   :  { %v790_v5 = vpop.f32.mrf.mxu1 }
 0x30c   :  { %v791_v2 = vadd.f32 %v790_v5, %v720_v63 }
 0x30d   :  { %v851_v3 = vpop.f32.mrf.mxu2 }
 0x30e   :  { %v870_v30 = vadd.f32 %v851_v3, %v791_v2 }
 0x30f   :  { %v723_v59 = vpop.f32.mrf.mxu0 }
 0x310   :  { %v918_v7 = vadd.f32 %v885_v6, %v870_v30 }
 0x312   :  { %v1295_v25 = vmul.f32 -1.442695, %v918_v7 }
 0x313   :  { %v793_v8 = vpop.f32.mrf.mxu1 }
 0x314   :  { %v794_v9 = vadd.f32 %v793_v8, %v723_v59  ;;  %1374 = vpow2.f32 %v1295_v25 }
 0x315   :  { %v854_v10 = vpop.f32.mrf.mxu2  ;;  %1376 = vpow2.f32 %v1294_v11 }
 0x316   :  { %v871_v27 = vadd.f32 %v854_v10, %v794_v9 }
 0x317   :  { %v725_v12 = vpop.f32.mrf.mxu0 }
 0x318   :  { %v919_v13 = vadd.f32 %v890_v62, %v871_v27 }
 0x31a   :  { %v1296_v14 = vmul.f32 -1.442695, %v919_v13  ;;  %v1375_v22 = vpop.eup %1374  ;;  %v900_v13 = vpop.permute.xlu0 %899 }
 0x31b   :  { %v795_v15 = vpop.f32.mrf.mxu1  ;;  %v1377_v24 = vpop.eup %1376  ;;  %v1891_v28 = vadd.f32 1.0, %v1375_v22 }
 0x31c   :  { %1378 = vpow2.f32 %v1296_v14  ;;  %v796_v16 = vadd.f32 %v795_v15, %v725_v12  ;;  %v1895_v33 = vadd.f32 1.0, %v1377_v24 }
 0x31d   :  { %v856_v19 = vpop.f32.mrf.mxu2  ;;  %vm961_vm10 = vweird.f32 %v1891_v28  ;;  %v965_v7 = vand.u32 2147483647, %v1891_v28  ;;  %v967_v0 = vand.u32 2147483648, %v1891_v28 }
 0x31e   :  { %v872_v21 = vadd.f32 %v856_v19, %v796_v16  ;;  %vm946_vm7 = vweird.f32 %v1895_v33  ;;  %v950_v2 = vand.u32 2147483647, %v1895_v33 }
 0x31f   :  { %v728_v23 = vpop.f32.mrf.mxu0  ;;  %vm1967_vm5 = vcmp.eq.f32.partialorder %v965_v7, 8.507059e+37 }
 0x320   :  { %v920_v37 = vadd.f32 %v895_v18, %v872_v21 }
 0x322   :  { %v1379_v26 = vpop.eup %1378  ;;  %v1297_v29 = vmul.f32 -1.442695, %v920_v37 }
 0x323   :  { %v1893_v32 = vadd.f32 1.0, %v1379_v26  ;;  %v798_v56 = vpop.f32.mrf.mxu1 }
 0x324   :  { %1380 = vpow2.f32 %v1297_v29  ;;  %v799_v58 = vadd.f32 %v798_v56, %v728_v23  ;;  %v915_v56 = vpop.permute.xlu2 %914 }
 0x325   :  { %1382 = vrcp.f32 %v1893_v32  ;;  %v859_v34 = vpop.f32.mrf.mxu2  ;;  %vm976_vm11 = vweird.f32 %v1893_v32  ;;  %v980_v27 = vand.u32 2147483647, %v1893_v32  ;;  %v982_v11 = vand.u32 2147483648, %v1893_v32 }
 0x326   :  { %1384 = vrcp.f32 %v1891_v28  ;;  %v873_v59 = vadd.f32 %v859_v34, %v799_v58 }
 0x327   :  { %v730_v35 = vpop.f32.mrf.mxu0  ;;  %1386 = vrcp.f32 %v1895_v33  ;;  %vm981_vm3 = vcmp.eq.f32.partialorder %v980_v27, 8.507059e+37  ;;  %v983_v34 = vor.u32 1.1754944e-38, %v982_v11 }
 0x328   :  { %v921_v19 = vadd.f32 %v900_v13, %v873_v59  ;;  %v1041_v59 = vpop.permute.xlu0 %1040  ;;  %v1340_v13 = vld [vmem:[%s2049_s10] sm:$0xff] }
 0x32a   :  { %v1381_v36 = vpop.eup %1380 }
 0x32b   :  { %v1900_v39 = vpop.eup %1382  ;;  %v1902_v40 = vadd.f32 1.0, %v1381_v36  ;;  %v800_v20 = vpop.f32.mrf.mxu1  ;;  %v952_v36 = vand.u32 2147483648, %v1895_v33 }
 0x32c   :  { %v1904_v41 = vpop.eup %1384  ;;  %v972_v45 = vmul.f32 %v1900_v39, %v1893_v32  ;;  %v801_v54 = vadd.f32 %v800_v20, %v730_v35  ;;  %vm977_vm12 = vweird.f32 %v1900_v39 }
 0x32d   :  { %1388 = vrcp.f32 %v1902_v40  ;;  %v861_v43 = vpop.f32.mrf.mxu2  ;;  %v1907_v44 = vpop.eup %1386  ;;  %v957_v46 = vmul.f32 %v1904_v41, %v1891_v28  ;;  %vm962_vm13 = vweird.f32 %v1904_v41  ;;  %vm1940_vm15 = vmor %vm976_vm11, %vm977_vm12  ;;  %vm991_vm0 = vweird.f32 %v1902_v40 }
 0x32e   :  { %v942_v52 = vmul.f32 %v1907_v44, %v1895_v33  ;;  %v973_v49 = vsub.f32 1.0, %v972_v45  ;;  %v874_v30 = vadd.f32 %v861_v43, %v801_v54  ;;  %vm947_vm9 = vweird.f32 %v1907_v44  ;;  %vm1956_vm2 = vmor %vm961_vm10, %vm962_vm13 }
 0x32f   :  { %v733_v48 = vpop.f32.mrf.mxu0  ;;  %v958_v53 = vsub.f32 1.0, %v957_v46  ;;  %v997_v18 = vand.u32 2147483648, %v1902_v40  ;;  %v995_v29 = vand.u32 2147483647, %v1902_v40  ;;  %vm1979_vm8 = vmor %vm946_vm7, %vm947_vm9  ;;  %vm951_vm7 = vcmp.eq.f32.partialorder %v950_v2, 8.507059e+37 }
 0x330   :  { %v943_v62 = vsub.f32 1.0, %v942_v52  ;;  %v974_v38 = vmul.f32 %v1900_v39, %v973_v49  ;;  %v922_v14 = vadd.f32 %v905_v1, %v874_v30  ;;  %v968_v52 = vor.u32 1.1754944e-38, %v967_v0  ;;  %v1026_v1 = vpop.permute.xlu1 %1025 }
 0x331   :  { %v959_v3 = vmul.f32 %v1904_v41, %v958_v53  ;;  %v1001_v49 = vsub.f32 %v921_v19, %v1672_v31  ;;  %vm996_vm6 = vcmp.eq.f32.partialorder %v995_v29, 8.507059e+37  ;;  %v953_v53 = vor.u32 1.1754944e-38, %v952_v36  ;;  %v1105_v19 = vpop.permute.xlu0 %1104 }
 0x332   :  { %v944_v6 = vmul.f32 %v1907_v44, %v943_v62  ;;  %v975_v9 = vadd.f32 %v1900_v39, %v974_v38  ;;  %v1002_v28 = vsub.f32 %v922_v14, %v1696_v61  ;;  %v1341_v14 = vld [vmem:[%s2049_s10 + $0x8] sm:$0xff] }
 0x333   :  { %v1915_v50 = vpop.eup %1388  ;;  %v803_v51 = vpop.f32.mrf.mxu1  ;;  %v960_v12 = vadd.f32 %v1904_v41, %v959_v3  ;;  %v1338_v3 = vld [vmem:[%s2048_s8] sm:$0xff] }
 0x334   :  { %v804_v55 = vadd.f32 %v803_v51, %v733_v48  ;;  %v987_v57 = vmul.f32 %v1915_v50, %v1902_v40  ;;  %vm992_vm14 = vweird.f32 %v1915_v50  ;;  %v945_v23 = vadd.f32 %v1907_v44, %v944_v6 }
 0x335   :  { %v864_v60 = vpop.f32.mrf.mxu2  ;;  %v979_v26 = vsel %vm1940_vm15, %v1900_v39, %v975_v9  ;;  %vm1962_vm4 = vmor %vm991_vm0, %vm992_vm14  ;;  %v964_v45 = vsel %vm1956_vm2, %v1904_v41, %v960_v12 }
 0x336   :  { %v875_v63 = vadd.f32 %v864_v60, %v804_v55  ;;  %v988_v5 = vsub.f32 1.0, %v987_v57  ;;  %v984_v46 = vsel %vm981_vm3, %v983_v34, %v979_v26  ;;  %v949_v48 = vsel %vm1979_vm8, %v1907_v44, %v945_v23 }
 0x337   :  { %v735_v25 = vpop.f32.mrf.mxu0  ;;  %v969_v54 = vsel %vm1967_vm5, %v968_v52, %v964_v45  ;;  %v954_v57 = vsel %vm951_vm7, %v953_v53, %v949_v48 }
 0x338   :  { %v989_v4 = vmul.f32 %v1915_v50, %v988_v5  ;;  %v923_v8 = vadd.f32 %v910_v47, %v875_v63  ;;  %v998_v47 = vor.u32 1.1754944e-38, %v997_v18  ;;  %v1006_v41 = vmul.f32 %v1002_v28, %v969_v54  ;;  %v1110_v22 = vpop.permute.xlu1 %1109 }
 0x339   :  { %v1005_v60 = vmul.f32 %v1001_v49, %v954_v57  ;;  %v1100_v23 = vpop.permute.xlu0 %1099 }
 0x33a   :  { %v990_v16 = vadd.f32 %v1915_v50, %v989_v4  ;;  %v1003_v37 = vsub.f32 %v923_v8, %v1731_v17  ;;  %v1010_v63 = vadd.f32 %v1006_v41, %v1696_v61  ;;  %v1036_v61 = vpop.permute.xlu2 %1035 }
 0x33b   :  { %v805_v10 = vpop.f32.mrf.mxu1  ;;  %v1009_v38 = vadd.f32 %v1005_v60, %v1672_v31 }
 0x33c   :  { %v806_v15 = vadd.f32 %v805_v10, %v735_v25  ;;  %v994_v20 = vsel %vm1962_vm4, %v1915_v50, %v990_v16  ;;  %v1007_v33 = vmul.f32 %v1003_v37, %v984_v46 }
 0x33d   :  { %v866_v21 = vpop.f32.mrf.mxu2  ;;  %v999_v51 = vsel %vm996_vm6, %v998_v47, %v994_v20  ;;  %v1017_v5 = vpack.c.bf16 %v1010_v63, %v1009_v38  ;;  %v1343_v20 = vld [vmem:[%s2050_s12 + $0x8] sm:$0xff] }
 0x33e   :  { %v876_v24 = vadd.f32 %v866_v21, %v806_v15  ;;  %v1011_v58 = vadd.f32 %v1007_v33, %v1731_v17  ;;  %v1339_v17 = vld [vmem:[%s2048_s8 + $0x8] sm:$0xff] }
 0x340   :  { %v924_v40 = vadd.f32 %v915_v56, %v876_v24  ;;  %v1164_v43 = vpop.permute.xlu1 %1163 }
 0x341   :  { %v1174_v49 = vpop.permute.xlu0 %1173 }
 0x342   :  { %v1004_v50 = vsub.f32 %v924_v40, %v1755_v42  ;;  %v1031_v4 = vpop.permute.xlu2 %1030  ;;  %v1342_v40 = vld [vmem:[%s2050_s12] sm:$0xff] }
 0x344   :  { %v1008_v55 = vmul.f32 %v1004_v50, %v999_v51 }
 0x346   :  { %v1012_v44 = vadd.f32 %v1008_v55, %v1755_v42 }
 0x348   :  { %v1018_v62 = vpack.c.bf16 %v1012_v44, %v1011_v58  ;;  %v1179_v51 = vpop.permute.xlu1 %1178 }
 0x34a   :  { %1065 = vmatpush.bf16.msrb.mxu3 %v1018_v62  ;;  %v1095_v29 = vpop.permute.xlu2 %1094 }
 0x34e   :  { %1066 = vmatpush.bf16.msrb.mxu3 %v1017_v5 }
 0x351   :  { %1306 = vmatmul.msk.bf16.vlgmr.msrb.gmra.mxu3 %vm251_vm1, %v1338_v3 }
 0x352   :  { %v1169_v47 = vpop.permute.xlu2 %1168 }
 0x361   :  { %1307 = vmatmul.msk.bf16.gmra.mxu3 %vm251_vm1, %v1339_v17 }
 0x3d4   :  { %v1068_v42 = vpop.f32.mrf.mxu3 }
 0x3d5   :  { %v1069_v8 = vadd.f32 %v1068_v42, %v1026_v1 }
 0x3d7   :  { %v1078_v11 = vmax.f32 %v1069_v8, 0.0 }
 0x3dc   :  { %v1070_v2 = vpop.f32.mrf.mxu3 }
 0x3dd   :  { %v1071_v7 = vadd.f32 %v1070_v2, %v1031_v4 }
 0x3df   :  { %v1079_v10 = vmax.f32 %v1071_v7, 0.0 }
 0x3e1   :  { %v1086_v12 = vpack.c.bf16 %v1079_v10, %v1078_v11 }
 0x3e4   :  { %v1073_v30 = vpop.f32.mrf.mxu3 }
 0x3e5   :  { %v1074_v31 = vadd.f32 %v1073_v30, %v1036_v61 }
 0x3e7   :  { %v1080_v9 = vmax.f32 %v1074_v31, 0.0 }
 0x3ec   :  { %v1075_v6 = vpop.f32.mrf.mxu3 }
 0x3ed   :  { %v1076_v0 = vadd.f32 %v1075_v6, %v1041_v59 }
 0x3ef   :  { %v1081_v25 = vmax.f32 %v1076_v0, 0.0 }
 0x3f1   :  { %v1087_v27 = vpack.c.bf16 %v1081_v25, %v1080_v9 }
 0x3f3   :  { %1134 = vmatpush.bf16.msra.mxu0 %v1087_v27 }
 0x3f7   :  { %1135 = vmatpush.bf16.msra.mxu0 %v1086_v12 }
 0x3fa   :  { %1316 = vmatmul.msk.bf16.vlgmr.msra.gmra.mxu0 %vm251_vm1, %v1340_v13 }
 0x40a   :  { %1317 = vmatmul.msk.bf16.gmra.mxu0 %vm251_vm1, %v1341_v14 }
 0x477   :  { %v1137_v15 = vpop.f32.mrf.mxu0 }
 0x478   :  { %v1138_v32 = vadd.f32 %v1137_v15, %v1095_v29 }
 0x47a   :  { %v1147_v39 = vmax.f32 %v1138_v32, 0.0 }
 0x47f   :  { %v1139_v16 = vpop.f32.mrf.mxu0 }
 0x480   :  { %v1140_v24 = vadd.f32 %v1139_v16, %v1100_v23 }
 0x482   :  { %v1148_v35 = vmax.f32 %v1140_v24, 0.0 }
 0x484   :  { %v1155_v28 = vpack.c.bf16 %v1148_v35, %v1147_v39 }
 0x487   :  { %v1142_v21 = vpop.f32.mrf.mxu0 }
 0x488   :  { %v1143_v18 = vadd.f32 %v1142_v21, %v1105_v19 }
 0x48a   :  { %v1149_v56 = vmax.f32 %v1143_v18, 0.0 }
 0x48f   :  { %v1144_v37 = vpop.f32.mrf.mxu0 }
 0x490   :  { %v1145_v26 = vadd.f32 %v1144_v37, %v1110_v22 }
 0x492   :  { %v1150_v34 = vmax.f32 %v1145_v26, 0.0 }
 0x494   :  { %v1156_v36 = vpack.c.bf16 %v1150_v34, %v1149_v56 }
 0x496   :  { %1203 = vmatpush.bf16.msra.mxu3 %v1156_v36 }
 0x49a   :  { %1204 = vmatpush.bf16.msra.mxu3 %v1155_v28 }
 0x49d   :  { %1326 = vmatmul.msk.bf16.vlgmr.msra.gmra.mxu3 %vm251_vm1, %v1342_v40 }
 0x4ad   :  { %1327 = vmatmul.msk.bf16.gmra.mxu3 %vm251_vm1, %v1343_v20 }
 0x520   :  { %v1206_v45 = vpop.f32.mrf.mxu3 }
 0x521   :  { %v1207_v46 = vadd.f32 %v1206_v45, %v1164_v43 }
 0x523   :  { %1216 = vst.msk [vmem:[%s2051_s14] sm:$0xff] %vm251_vm1, %v1207_v46 }
 0x528   :  { %v1208_v48 = vpop.f32.mrf.mxu3 }
 0x529   :  { %v1209_v52 = vadd.f32 %v1208_v48, %v1169_v47 }
 0x52b   :  { %1217 = vst.msk [vmem:[%s2051_s14 + $0x8] sm:$0xff] %vm251_vm1, %v1209_v52 }
 0x530   :  { %v1211_v50 = vpop.f32.mrf.mxu3 }
 0x531   :  { %v1212_v33 = vadd.f32 %v1211_v50, %v1174_v49 }
 0x533   :  { %1218 = vst.msk [vmem:[%s2051_s14 + $0x10] sm:$0xff] %vm251_vm1, %v1212_v33 }
 0x538   :  { %v1213_v53 = vpop.f32.mrf.mxu3 }
 0x539   :  { %v1214_v54 = vadd.f32 %v1213_v53, %v1179_v51 }
 0x53b   :  { %1219 = vst.msk [vmem:[%s2051_s14 + $0x18] sm:$0xff] %vm251_vm1, %v1214_v54 }

</bundles_post_ra>
